<compile_context>
chip_gen: v6e
topology: v6e:2x2x1
jax: 0.10.0
libtpu: 0.0.40
codegen_flags: <defaults>
</compile_context>

<pallas_src>
import functools

import jax
import jax.numpy as jnp
from jax.experimental import pallas as pl
from jax.experimental.pallas import tpu as pltpu


def _block_kernel(x_ref, vec_ref, wqkv_ref, wproj_ref, wfc1_ref, wfc2_ref,
                  o_ref, *, batch, seq, num_heads, hidden, eps):
    B, N, H, F = batch, seq, num_heads, hidden
    M, C = x_ref.shape                       # M = B * N (batch folded into rows)
    hd = C // H
    G = B * H
    GN = G * N
    f32 = jnp.float32
    bf16 = jnp.bfloat16

    x = x_ref[...]                           # (M, C) f32 residual stream

    # ---- packed small vector params: one (8, L) slab, one row per param ----
    ln1_w = vec_ref[0:1, :C]
    ln1_b = vec_ref[1:2, :C]
    proj_b = vec_ref[2:3, :C]
    ln2_w = vec_ref[3:4, :C]
    ln2_b = vec_ref[4:5, :C]
    fc2_b = vec_ref[5:6, :C]
    fc1_b = vec_ref[6:7, :F]

    def layernorm(t, w, b):
        # E[x] and E[x^2] reduce concurrently from t; var = E[x^2] - mu^2
        # (shorter serial XLU chain than mean -> center -> mean(center^2)).
        mu = jnp.mean(t, axis=-1, keepdims=True)
        ms = jnp.mean(t * t, axis=-1, keepdims=True)
        var = ms - mu * mu
        return (t - mu) * jax.lax.rsqrt(var + eps) * w + b

    # ---------------- Attention branch ----------------
    h1 = layernorm(x, ln1_w, ln1_b)                                     # (M, C)

    # qkv projection: bf16 operands -> MXU, f32 accumulation.
    # (attention scale already folded into the q columns of wqkv_ref)
    qkv = jnp.dot(h1.astype(bf16), wqkv_ref[...],
                  preferred_element_type=f32)                           # (M, 3C)

    q = qkv[:, :C]
    k = qkv[:, C:2 * C]
    v = qkv[:, 2 * C:]

    # Head split in f32; cast to bf16 only at the dots.
    def to_flat_heads(t):                    # (M, C) -> (G*N, hd), rows = (b, h, n)
        return t.reshape(B, N, H, hd).transpose(0, 2, 1, 3).reshape(GN, hd)

    qh = to_flat_heads(q)
    kh = to_flat_heads(k)
    vh = to_flat_heads(v)

    # One flat (GN, hd) x (hd, GN) MXU matmul instead of G tiny batched dots.
    s = jnp.einsum('qd,kd->qk', qh.astype(bf16), kh.astype(bf16),
                   preferred_element_type=f32)                          # (GN, GN)

    # Block-diagonal mask: keep only scores where row and column belong to the
    # same (batch, head) group of N tokens.
    r = jax.lax.broadcasted_iota(jnp.int32, (GN, GN), 0)
    c = jax.lax.broadcasted_iota(jnp.int32, (GN, GN), 1)
    if (N & (N - 1)) == 0:                   # power-of-two seq: shift for group id
        shift = N.bit_length() - 1
        same_group = (r >> shift) == (c >> shift)
    else:
        same_group = (r // N) == (c // N)
    s = jnp.where(same_group, s, jnp.float32(-1e30))

    # Numerically stable softmax over dense 128-lane rows; normalization
    # deferred to the small (GN, hd) output.
    s_max = jnp.max(s, axis=-1, keepdims=True)
    p = jnp.exp(s - s_max)                                              # (GN, GN)
    denom = jnp.sum(p, axis=-1, keepdims=True)                          # (GN, 1)

    oh = jnp.dot(p.astype(bf16), vh.astype(bf16),
                 preferred_element_type=f32)                            # (GN, hd)
    oh = oh * pl.reciprocal(denom, approx=True)                         # EUP recip

    # Regroup heads in f32; cast to bf16 at the projection dot.
    attn_out = oh.reshape(B, H, N, hd).transpose(0, 2, 1, 3).reshape(M, C)
    attn_out = jnp.dot(attn_out.astype(bf16), wproj_ref[...],
                       preferred_element_type=f32) + proj_b

    x = x + attn_out                         # residual 1 (drop_path = identity)

    # ---------------- MLP branch ----------------
    h2 = layernorm(x, ln2_w, ln2_b)
    hid = jnp.dot(h2.astype(bf16), wfc1_ref[...],
                  preferred_element_type=f32) + fc1_b                   # (M, 4C)
    # TODO(synk): torch nn.GELU() default is the exact erf form; the tanh
    # approximation is used in-kernel (max abs deviation ~1e-3, inside test tol).
    hid = jax.nn.gelu(hid, approximate=True)
    mlp_out = jnp.dot(hid.astype(bf16), wfc2_ref[...],
                      preferred_element_type=f32) + fc2_b               # (M, C)

    x = x + mlp_out                          # residual 2 (drop_path = identity)

    o_ref[...] = x.astype(o_ref.dtype)


def vit_block_pallas(x, params, *, num_heads, eps=1e-5):
    """x: (B, N, C) f32. params: torch-shaped weights (Linear weights are (out, in))."""
    B, N, C = x.shape
    M = B * N
    hd = C // num_heads
    scale = hd ** (-0.5)
    hidden = params['fc1_w'].shape[0]
    L = max(128, C, hidden)                  # lane width of the packed vector slab

    # torch Linear computes x @ W^T -> pre-transpose once; fold the attention
    # scale into the q output-columns of Wqkv; cast weights to bf16 for the MXU.
    wqkv_t = jnp.transpose(params['qkv_w'])                             # (C, 3C)
    col_scale = jnp.concatenate([jnp.full((C,), scale, jnp.float32),
                                 jnp.ones((2 * C,), jnp.float32)])
    wqkv_t = (wqkv_t * col_scale[None, :]).astype(jnp.bfloat16)
    wproj_t = jnp.transpose(params['proj_w']).astype(jnp.bfloat16)      # (C, C)
    wfc1_t = jnp.transpose(params['fc1_w']).astype(jnp.bfloat16)        # (C, 4C)
    wfc2_t = jnp.transpose(params['fc2_w']).astype(jnp.bfloat16)        # (4C, C)

    # Pack the seven small f32 vector params into one (8, L) slab (one row per
    # param) -> 6 kernel inputs instead of 12 (halves the DMA prologue).
    def pad_row(v):
        v = v.astype(jnp.float32)
        return jnp.pad(v, (0, L - v.shape[0]))

    vec_slab = jnp.stack([
        pad_row(params['ln1_w']),            # row 0
        pad_row(params['ln1_b']),            # row 1
        pad_row(params['proj_b']),           # row 2
        pad_row(params['ln2_w']),            # row 3
        pad_row(params['ln2_b']),            # row 4
        pad_row(params['fc2_b']),            # row 5
        pad_row(params['fc1_b']),            # row 6
        jnp.zeros((L,), jnp.float32),        # row 7 (pad to full sublane tile)
    ])                                       # (8, L)

    kernel = functools.partial(_block_kernel, batch=B, seq=N,
                               num_heads=num_heads, hidden=hidden, eps=eps)

    # Grid-less call: the whole problem (a few KiB of activations + <100 KiB of
    # bf16 weights + a 64 KiB score slab) lives in VMEM for one invocation —
    # no per-step pipeline overhead, no serialized batch loop.
    y = pl.pallas_call(
        kernel,
        out_shape=jax.ShapeDtypeStruct((M, C), jnp.float32),
        compiler_params=pltpu.CompilerParams(
            vmem_limit_bytes=4 * 1024 * 1024),   # honest: kernel needs < 1 MiB
    )(
        x.reshape(M, C).astype(jnp.float32),     # batch folded into M
        vec_slab, wqkv_t, wproj_t, wfc1_t, wfc2_t,
    )
    return y.reshape(B, N, C)


def vit_block_reference(x, params, *, num_heads, eps=1e-5):
    """Pure-JAX f32 reference mirroring the PyTorch Block.forward (eval mode)."""
    B, N, C = x.shape
    hd = C // num_heads
    scale = hd ** (-0.5)

    def layernorm(t, w, b):
        mu = jnp.mean(t, axis=-1, keepdims=True)
        var = jnp.mean((t - mu) ** 2, axis=-1, keepdims=True)
        return (t - mu) / jnp.sqrt(var + eps) * w + b

    # attention branch
    h = layernorm(x, params['ln1_w'], params['ln1_b'])
    qkv = jnp.einsum('bnc,oc->bno', h, params['qkv_w'])
    qkv = qkv.reshape(B, N, 3, num_heads, hd).transpose(2, 0, 3, 1, 4)
    q, k, v = qkv[0], qkv[1], qkv[2]
    attn = jnp.einsum('bhqd,bhkd->bhqk', q, k) * scale
    attn = jax.nn.softmax(attn, axis=-1)
    out = jnp.einsum('bhqk,bhkd->bhqd', attn, v)
    out = out.transpose(0, 2, 1, 3).reshape(B, N, C)
    out = jnp.einsum('bnc,oc->bno', out, params['proj_w']) + params['proj_b']
    x = x + out

    # mlp branch
    h = layernorm(x, params['ln2_w'], params['ln2_b'])
    hid = jnp.einsum('bnc,hc->bnh', h, params['fc1_w']) + params['fc1_b']
    hid = jax.nn.gelu(hid, approximate=False)          # torch nn.GELU() = exact erf
    mlp = jnp.einsum('bnh,ch->bnc', hid, params['fc2_w']) + params['fc2_b']
    return x + mlp


if __name__ == "__main__":
    # dim=32, num_heads=8 (head_dim=4), mlp_ratio=4 -> hidden=128, tokens=8, batch=2
    B, N, C = 2, 8, 32
    num_heads = 8
    hidden = 4 * C

    key = jax.random.PRNGKey(0)
    ks = jax.random.split(key, 12)

    x = jax.random.normal(ks[0], (B, N, C), dtype=jnp.float32)
    params = {
        'ln1_w': 1.0 + 0.1 * jax.random.normal(ks[1], (C,), jnp.float32),
        'ln1_b': 0.1 * jax.random.normal(ks[2], (C,), jnp.float32),
        'qkv_w': 0.05 * jax.random.normal(ks[3], (3 * C, C), jnp.float32),
        'proj_w': 0.05 * jax.random.normal(ks[4], (C, C), jnp.float32),
        'proj_b': 0.05 * jax.random.normal(ks[5], (C,), jnp.float32),
        'ln2_w': 1.0 + 0.1 * jax.random.normal(ks[6], (C,), jnp.float32),
        'ln2_b': 0.1 * jax.random.normal(ks[7], (C,), jnp.float32),
        'fc1_w': 0.05 * jax.random.normal(ks[8], (hidden, C), jnp.float32),
        'fc1_b': 0.05 * jax.random.normal(ks[9], (hidden,), jnp.float32),
        'fc2_w': 0.05 * jax.random.normal(ks[10], (C, hidden), jnp.float32),
        'fc2_b': 0.05 * jax.random.normal(ks[11], (C,), jnp.float32),
    }

    y = vit_block_pallas(x, params, num_heads=num_heads)
    y = jax.block_until_ready(y)

    y_ref = vit_block_reference(x, params, num_heads=num_heads)
    assert y.shape == (B, N, C)
    max_err = float(jnp.max(jnp.abs(y - y_ref)))
    # bf16 matmul operands (f32 accumulation) + tanh-approx GELU + approx
    # reciprocal -> looser tolerance
    assert jnp.allclose(y, y_ref, atol=2e-2, rtol=2e-2), (
        f"mismatch vs reference (max abs err={max_err})")

    print("KERNEL_OK")
</pallas_src>

<mosaic_0001>
module attributes {stable_mosaic.version = 11 : i64} {
  func.func @_block_kernel(%arg0: memref<16x32xf32, #tpu.memory_space<vmem>>, %arg1: memref<8x128xf32, #tpu.memory_space<vmem>>, %arg2: memref<32x96xbf16, #tpu.memory_space<vmem>>, %arg3: memref<32x32xbf16, #tpu.memory_space<vmem>>, %arg4: memref<32x128xbf16, #tpu.memory_space<vmem>>, %arg5: memref<128x32xbf16, #tpu.memory_space<vmem>>, %arg6: memref<16x32xf32, #tpu.memory_space<vmem>>) attributes {dimension_semantics = [], scalar_prefetch = 0 : i64, scratch_operands = 0 : i64, tpu.core_type = #tpu.core_type<tc>} {
    %c0 = arith.constant 0 : index
    %c0_0 = arith.constant 0 : index
    %0 = vector.load %arg0[%c0, %c0_0] : memref<16x32xf32, #tpu.memory_space<vmem>>, vector<16x32xf32>
    %c0_1 = arith.constant 0 : index
    %c0_2 = arith.constant 0 : index
    %1 = vector.load %arg1[%c0_1, %c0_2] : memref<8x128xf32, #tpu.memory_space<vmem>>, vector<1x32xf32>
    %c1 = arith.constant 1 : index
    %c0_3 = arith.constant 0 : index
    %2 = vector.load %arg1[%c1, %c0_3] : memref<8x128xf32, #tpu.memory_space<vmem>>, vector<1x32xf32>
    %c2 = arith.constant 2 : index
    %c0_4 = arith.constant 0 : index
    %3 = vector.load %arg1[%c2, %c0_4] : memref<8x128xf32, #tpu.memory_space<vmem>>, vector<1x32xf32>
    %c3 = arith.constant 3 : index
    %c0_5 = arith.constant 0 : index
    %4 = vector.load %arg1[%c3, %c0_5] : memref<8x128xf32, #tpu.memory_space<vmem>>, vector<1x32xf32>
    %c4 = arith.constant 4 : index
    %c0_6 = arith.constant 0 : index
    %5 = vector.load %arg1[%c4, %c0_6] : memref<8x128xf32, #tpu.memory_space<vmem>>, vector<1x32xf32>
    %c5 = arith.constant 5 : index
    %c0_7 = arith.constant 0 : index
    %6 = vector.load %arg1[%c5, %c0_7] : memref<8x128xf32, #tpu.memory_space<vmem>>, vector<1x32xf32>
    %c6 = arith.constant 6 : index
    %c0_8 = arith.constant 0 : index
    %7 = vector.load %arg1[%c6, %c0_8] : memref<8x128xf32, #tpu.memory_space<vmem>>, vector<1x128xf32>
    %cst = arith.constant dense<0.000000e+00> : vector<16xf32>
    %8 = vector.multi_reduction <add>, %0, %cst [1] : vector<16x32xf32> to vector<16xf32>
    %9 = vector.shape_cast %8 : vector<16xf32> to vector<16x1xf32>
    %cst_9 = arith.constant 3.200000e+01 : f32
    %10 = vector.broadcast %cst_9 : f32 to vector<16x1xf32>
    %11 = arith.divf %9, %10 : vector<16x1xf32>
    %12 = arith.mulf %0, %0 : vector<16x32xf32>
    %cst_10 = arith.constant dense<0.000000e+00> : vector<16xf32>
    %13 = vector.multi_reduction <add>, %12, %cst_10 [1] : vector<16x32xf32> to vector<16xf32>
    %14 = vector.shape_cast %13 : vector<16xf32> to vector<16x1xf32>
    %cst_11 = arith.constant 3.200000e+01 : f32
    %15 = vector.broadcast %cst_11 : f32 to vector<16x1xf32>
    %16 = arith.divf %14, %15 : vector<16x1xf32>
    %17 = arith.mulf %11, %11 : vector<16x1xf32>
    %18 = arith.subf %16, %17 : vector<16x1xf32>
    %19 = vector.broadcast %11 : vector<16x1xf32> to vector<16x32xf32>
    %20 = arith.subf %0, %19 : vector<16x32xf32>
    %cst_12 = arith.constant 9.99999974E-6 : f32
    %21 = vector.broadcast %cst_12 : f32 to vector<16x1xf32>
    %22 = arith.addf %18, %21 : vector<16x1xf32>
    %23 = math.rsqrt %22 : vector<16x1xf32>
    %24 = vector.broadcast %23 : vector<16x1xf32> to vector<16x32xf32>
    %25 = arith.mulf %20, %24 : vector<16x32xf32>
    %26 = vector.broadcast %1 : vector<1x32xf32> to vector<16x32xf32>
    %27 = arith.mulf %25, %26 : vector<16x32xf32>
    %28 = vector.broadcast %2 : vector<1x32xf32> to vector<16x32xf32>
    %29 = arith.addf %27, %28 : vector<16x32xf32>
    %30 = arith.truncf %29 : vector<16x32xf32> to vector<16x32xbf16>
    %c0_13 = arith.constant 0 : index
    %c0_14 = arith.constant 0 : index
    %31 = vector.load %arg2[%c0_13, %c0_14] : memref<32x96xbf16, #tpu.memory_space<vmem>>, vector<32x96xbf16>
    %cst_15 = arith.constant dense<0.000000e+00> : vector<16x96xf32>
    %32 = tpu.matmul %30, %31, %cst_15 {dimension_numbers = #tpu.dot_dimension_numbers<[1], [0], [0], [1], [0, 0, 1, 1], [], []>} : vector<16x32xbf16>, vector<32x96xbf16>, vector<16x96xf32> -> vector<16x96xf32>
    %33 = vector.extract_strided_slice %32 {offsets = [0, 0], sizes = [16, 32], strides = [1, 1]} : vector<16x96xf32> to vector<16x32xf32>
    %34 = vector.extract_strided_slice %32 {offsets = [0, 32], sizes = [16, 32], strides = [1, 1]} : vector<16x96xf32> to vector<16x32xf32>
    %35 = vector.extract_strided_slice %32 {offsets = [0, 64], sizes = [16, 32], strides = [1, 1]} : vector<16x96xf32> to vector<16x32xf32>
    %36 = vector.shape_cast %33 : vector<16x32xf32> to vector<2x8x8x4xf32>
    %37 = tpu.transpose %36, [0, 2, 1, 3] : vector<2x8x8x4xf32> -> vector<2x8x8x4xf32>
    %38 = vector.shape_cast %37 : vector<2x8x8x4xf32> to vector<128x4xf32>
    %39 = vector.shape_cast %34 : vector<16x32xf32> to vector<2x8x8x4xf32>
    %40 = tpu.transpose %39, [0, 2, 1, 3] : vector<2x8x8x4xf32> -> vector<2x8x8x4xf32>
    %41 = vector.shape_cast %40 : vector<2x8x8x4xf32> to vector<128x4xf32>
    %42 = vector.shape_cast %35 : vector<16x32xf32> to vector<2x8x8x4xf32>
    %43 = tpu.transpose %42, [0, 2, 1, 3] : vector<2x8x8x4xf32> -> vector<2x8x8x4xf32>
    %44 = vector.shape_cast %43 : vector<2x8x8x4xf32> to vector<128x4xf32>
    %45 = arith.truncf %38 : vector<128x4xf32> to vector<128x4xbf16>
    %46 = arith.truncf %41 : vector<128x4xf32> to vector<128x4xbf16>
    "tpu.trace_start"() <{level = 10 : i32, message = "qd,kd->qk"}> : () -> ()
    %cst_16 = arith.constant dense<0.000000e+00> : vector<128x128xf32>
    %47 = tpu.matmul %45, %46, %cst_16 {dimension_numbers = #tpu.dot_dimension_numbers<[1], [1], [0], [0], [0, 0, 1, 0], [], []>} : vector<128x4xbf16>, vector<128x4xbf16>, vector<128x128xf32> -> vector<128x128xf32>
    "tpu.trace_stop"() : () -> ()
    %48 = tpu.iota {dimensions = array<i32: 0>} : vector<128x128xi32>
    %49 = tpu.iota {dimensions = array<i32: 1>} : vector<128x128xi32>
    %c3_i32 = arith.constant 3 : i32
    %50 = vector.broadcast %c3_i32 : i32 to vector<128x128xi32>
    %51 = arith.shrsi %48, %50 : vector<128x128xi32>
    %c3_i32_17 = arith.constant 3 : i32
    %52 = vector.broadcast %c3_i32_17 : i32 to vector<128x128xi32>
    %53 = arith.shrsi %49, %52 : vector<128x128xi32>
    %54 = arith.cmpi eq, %51, %53 : vector<128x128xi32>
    %cst_18 = arith.constant -1.000000e+30 : f32
    %55 = vector.broadcast %cst_18 : f32 to vector<128x128xf32>
    %56 = arith.select %54, %47, %55 : vector<128x128xi1>, vector<128x128xf32>
    %cst_19 = arith.constant dense<0xFF800000> : vector<128xf32>
    %57 = vector.multi_reduction <maximumf>, %56, %cst_19 [1] : vector<128x128xf32> to vector<128xf32>
    %58 = vector.shape_cast %57 : vector<128xf32> to vector<128x1xf32>
    %59 = vector.broadcast %58 : vector<128x1xf32> to vector<128x128xf32>
    %60 = arith.subf %56, %59 : vector<128x128xf32>
    %61 = math.exp %60 : vector<128x128xf32>
    %cst_20 = arith.constant dense<0.000000e+00> : vector<128xf32>
    %62 = vector.multi_reduction <add>, %61, %cst_20 [1] : vector<128x128xf32> to vector<128xf32>
    %63 = vector.shape_cast %62 : vector<128xf32> to vector<128x1xf32>
    %64 = arith.truncf %61 : vector<128x128xf32> to vector<128x128xbf16>
    %65 = arith.truncf %44 : vector<128x4xf32> to vector<128x4xbf16>
    %cst_21 = arith.constant dense<0.000000e+00> : vector<128x4xf32>
    %66 = tpu.matmul %64, %65, %cst_21 {dimension_numbers = #tpu.dot_dimension_numbers<[1], [0], [0], [1], [0, 0, 1, 1], [], []>} : vector<128x128xbf16>, vector<128x4xbf16>, vector<128x4xf32> -> vector<128x4xf32>
    %67 = tpu.reciprocal %63 {approx = true} : vector<128x1xf32> -> vector<128x1xf32>
    %68 = vector.broadcast %67 : vector<128x1xf32> to vector<128x4xf32>
    %69 = arith.mulf %66, %68 : vector<128x4xf32>
    %70 = vector.shape_cast %69 : vector<128x4xf32> to vector<2x8x8x4xf32>
    %71 = tpu.transpose %70, [0, 2, 1, 3] : vector<2x8x8x4xf32> -> vector<2x8x8x4xf32>
    %72 = vector.shape_cast %71 : vector<2x8x8x4xf32> to vector<16x32xf32>
    %73 = arith.truncf %72 : vector<16x32xf32> to vector<16x32xbf16>
    %c0_22 = arith.constant 0 : index
    %c0_23 = arith.constant 0 : index
    %74 = vector.load %arg3[%c0_22, %c0_23] : memref<32x32xbf16, #tpu.memory_space<vmem>>, vector<32x32xbf16>
    %cst_24 = arith.constant dense<0.000000e+00> : vector<16x32xf32>
    %75 = tpu.matmul %73, %74, %cst_24 {dimension_numbers = #tpu.dot_dimension_numbers<[1], [0], [0], [1], [0, 0, 1, 1], [], []>} : vector<16x32xbf16>, vector<32x32xbf16>, vector<16x32xf32> -> vector<16x32xf32>
    %76 = vector.broadcast %3 : vector<1x32xf32> to vector<16x32xf32>
    %77 = arith.addf %75, %76 : vector<16x32xf32>
    %78 = arith.addf %0, %77 : vector<16x32xf32>
    %cst_25 = arith.constant dense<0.000000e+00> : vector<16xf32>
    %79 = vector.multi_reduction <add>, %78, %cst_25 [1] : vector<16x32xf32> to vector<16xf32>
    %80 = vector.shape_cast %79 : vector<16xf32> to vector<16x1xf32>
    %cst_26 = arith.constant 3.200000e+01 : f32
    %81 = vector.broadcast %cst_26 : f32 to vector<16x1xf32>
    %82 = arith.divf %80, %81 : vector<16x1xf32>
    %83 = arith.mulf %78, %78 : vector<16x32xf32>
    %cst_27 = arith.constant dense<0.000000e+00> : vector<16xf32>
    %84 = vector.multi_reduction <add>, %83, %cst_27 [1] : vector<16x32xf32> to vector<16xf32>
    %85 = vector.shape_cast %84 : vector<16xf32> to vector<16x1xf32>
    %cst_28 = arith.constant 3.200000e+01 : f32
    %86 = vector.broadcast %cst_28 : f32 to vector<16x1xf32>
    %87 = arith.divf %85, %86 : vector<16x1xf32>
    %88 = arith.mulf %82, %82 : vector<16x1xf32>
    %89 = arith.subf %87, %88 : vector<16x1xf32>
    %90 = vector.broadcast %82 : vector<16x1xf32> to vector<16x32xf32>
    %91 = arith.subf %78, %90 : vector<16x32xf32>
    %cst_29 = arith.constant 9.99999974E-6 : f32
    %92 = vector.broadcast %cst_29 : f32 to vector<16x1xf32>
    %93 = arith.addf %89, %92 : vector<16x1xf32>
    %94 = math.rsqrt %93 : vector<16x1xf32>
    %95 = vector.broadcast %94 : vector<16x1xf32> to vector<16x32xf32>
    %96 = arith.mulf %91, %95 : vector<16x32xf32>
    %97 = vector.broadcast %4 : vector<1x32xf32> to vector<16x32xf32>
    %98 = arith.mulf %96, %97 : vector<16x32xf32>
    %99 = vector.broadcast %5 : vector<1x32xf32> to vector<16x32xf32>
    %100 = arith.addf %98, %99 : vector<16x32xf32>
    %101 = arith.truncf %100 : vector<16x32xf32> to vector<16x32xbf16>
    %c0_30 = arith.constant 0 : index
    %c0_31 = arith.constant 0 : index
    %102 = vector.load %arg4[%c0_30, %c0_31] : memref<32x128xbf16, #tpu.memory_space<vmem>>, vector<32x128xbf16>
    %cst_32 = arith.constant dense<0.000000e+00> : vector<16x128xf32>
    %103 = tpu.matmul %101, %102, %cst_32 {dimension_numbers = #tpu.dot_dimension_numbers<[1], [0], [0], [1], [0, 0, 1, 1], [], []>} : vector<16x32xbf16>, vector<32x128xbf16>, vector<16x128xf32> -> vector<16x128xf32>
    %104 = vector.broadcast %7 : vector<1x128xf32> to vector<16x128xf32>
    %105 = arith.addf %103, %104 : vector<16x128xf32>
    %106 = arith.mulf %105, %105 : vector<16x128xf32>
    %107 = arith.mulf %105, %106 : vector<16x128xf32>
    %cst_33 = arith.constant 4.471500e-02 : f32
    %108 = vector.broadcast %cst_33 : f32 to vector<16x128xf32>
    %109 = arith.mulf %108, %107 : vector<16x128xf32>
    %110 = arith.addf %105, %109 : vector<16x128xf32>
    %cst_34 = arith.constant 0.797884583 : f32
    %111 = vector.broadcast %cst_34 : f32 to vector<16x128xf32>
    %112 = arith.mulf %111, %110 : vector<16x128xf32>
    %113 = math.tanh %112 : vector<16x128xf32>
    %cst_35 = arith.constant 1.000000e+00 : f32
    %114 = vector.broadcast %cst_35 : f32 to vector<16x128xf32>
    %115 = arith.addf %114, %113 : vector<16x128xf32>
    %cst_36 = arith.constant 5.000000e-01 : f32
    %116 = vector.broadcast %cst_36 : f32 to vector<16x128xf32>
    %117 = arith.mulf %116, %115 : vector<16x128xf32>
    %118 = arith.mulf %105, %117 : vector<16x128xf32>
    %119 = arith.truncf %118 : vector<16x128xf32> to vector<16x128xbf16>
    %c0_37 = arith.constant 0 : index
    %c0_38 = arith.constant 0 : index
    %120 = vector.load %arg5[%c0_37, %c0_38] : memref<128x32xbf16, #tpu.memory_space<vmem>>, vector<128x32xbf16>
    %cst_39 = arith.constant dense<0.000000e+00> : vector<16x32xf32>
    %121 = tpu.matmul %119, %120, %cst_39 {dimension_numbers = #tpu.dot_dimension_numbers<[1], [0], [0], [1], [0, 0, 1, 1], [], []>} : vector<16x128xbf16>, vector<128x32xbf16>, vector<16x32xf32> -> vector<16x32xf32>
    %122 = vector.broadcast %6 : vector<1x32xf32> to vector<16x32xf32>
    %123 = arith.addf %121, %122 : vector<16x32xf32>
    %124 = arith.addf %78, %123 : vector<16x32xf32>
    %c0_40 = arith.constant 0 : index
    %c0_41 = arith.constant 0 : index
    %125 = vector.load %arg6[%c0_40, %c0_41] : memref<16x32xf32, #tpu.memory_space<vmem>>, vector<16x32xf32>
    tpu.vector_store %arg6[%c0_40, %c0_41], %124 {strides = array<i32>} : memref<16x32xf32, #tpu.memory_space<vmem>>, vector<16x32xf32>,
    return
  }
}

</mosaic_0001>

<bundles_post_ra>
// kernel: tpu_custom_call.1
= control target key start
LH: loop header
LB: loop body
LE: loop exit
PB: predicated region body
PF: predicated region fallthrough
CT: control target
= control target key end

     0   :  { %vm34_vm0 = vcmask 261120   ;;  %s4673_s0 = inlined_call_operand.vmem [shape: f32[16,32], index: 0, kind: input, shape index: {}]   ;;  %s4674_s1 = inlined_call_operand.vmem [shape: f32[8,128], index: 1, kind: input, shape index: {}]   ;;  %s4675_s2 = inlined_call_operand.vmem [shape: bf16[32,96], index: 2, kind: input, shape index: {}]   ;;  %s4676_s3 = inlined_call_operand.vmem [shape: bf16[32,32], index: 3, kind: input, shape index: {}]   ;;  %s4677_s4 = inlined_call_operand.vmem [shape: bf16[32,128], index: 4, kind: input, shape index: {}]   ;;  %s4678_s5 = inlined_call_operand.vmem [shape: bf16[128,32], index: 5, kind: input, shape index: {}]   ;;  %s4679_s6 = inlined_call_operand.hbm [shape: f32[16,32], index: 6, kind: output, shape index: {}]  }
   0x1   :  { %v25_v0 = vld [vmem:[%s4673_s0] sm:$0xff]  ;;  %v26_v1 = vld [vmem:[%s4673_s0 + $0x8] sm:$0xff] }
   0x2   :  { %v35_v2 = vsel %vm34_vm0, %v25_v0, 0.0  ;;  %v44_v3 = vmul.f32 %v25_v0, %v25_v0  ;;  %v38_v4 = vsel %vm34_vm0, %v26_v1, 0.0  ;;  %v45_v5 = vmul.f32 %v26_v1, %v26_v1 }
   0x3   :  { %36 = vadd.xlane.f32.xlu0 %v35_v2 }
   0x4   :  { %v46_v6 = vsel %vm34_vm0, %v44_v3, 0.0  ;;  %v49_v7 = vsel %vm34_vm0, %v45_v5, 0.0 }
   0x5   :  { %47 = vadd.xlane.f32.xlu1 %v46_v6 }
   0x7   :  { %39 = vadd.xlane.f32.xlu0 %v38_v4 }
   0x9   :  { %50 = vadd.xlane.f32.xlu1 %v49_v7 }
   0xa   :  { %11 = vsyncpa [#allocation3], 0  ;;  %v3659_v8 = vld [vmem:[%s4675_s2 + $0x8] sm:$0xff]   ;;  %v3773_v9 = vmov 0.0   ;;  %vm3774_vm1 = vmmov 0   ;;  %v3660_v10 = vld [vmem:[%s4675_s2] sm:$0xff]   ;;  %v188_v44 = vlaneseq }
   0xb   :  { %3486 = vmatprep.subr.bf16.mxu0 %v3773_v9  ;;  %3490 = vmatprep.mubr.msk.bf16.mxu0 %vm3774_vm1, %v3773_v9  ;;  %v3340_v28 = vld [vmem:[%s4674_s1] ss:$0 sm:$0xff]  ;;  %v3341_v33 = vld [vmem:[%s4674_s1 + $0x1] ss:$0 sm:$0xff]  ;;  %s3775_s8 = smov 108   ;;  %s3776_s9 = smov 112  }
   0xc   :  { %3487 = vmatpush3.bf16.msra.mxu0 %v3659_v8  ;;  %s3777_s10 = smov 104   ;;  %s3778_s11 = smov 124   ;;  %v3782_v42 = vmov 1983009808   ;;  %v3784_v47 = vmov 1934713408  }
   0xd   :  { %3488 = vmatprep.subr.bf16.mxu0 %v3773_v9  ;;  %s3779_s12 = smov 100   ;;  %s3780_s13 = smov 116   ;;  %v186_v43 = vunpack.c.l.s4 %v3782_v42  ;;  %v250_v48 = vunpack.c.l.s4 %v3784_v47  ;;  %v3884_v50 = vshrl.u32 %v188_v44, 7  ;;  %vm1927_vm2 = vcmask 31744  }
   0xe   :  { %s3781_s14 = smov 120   ;;  %s3783_s15 = smov 96  }
   0xf   :  { %v187_v49 = vunpack.c.0.s8 %v186_v43  ;;  %v251_v55 = vunpack.c.0.s8 %v250_v48  ;;  %s3785_s16 = smov 64   ;;  %s3787_s21 = smov 4  }
  0x10   :  { %3489 = vmatpush3.bf16.msra.mxu0 %v3660_v10  ;;  %s3788_s22 = smov 12   ;;  %s3789_s23 = smov 20  }
  0x11   :  { %v3897_v56 = vsub.s32 %v187_v49, %v3884_v50  ;;  %v3914_v63 = vsub.s32 %v251_v55, %v3884_v50  ;;  %s3790_s24 = smov 16   ;;  %s3791_s25 = smov 28  }
  0x12   :  { %s3792_s26 = smov 24  }
  0x8c   :  { %v37_v11 = vpop.xlane.xlu0 %36 }
  0x8d   :  { %v42_v12 = vmul.f32 0.03125, %v37_v11 }
  0x8e   :  { %v48_v13 = vpop.xlane.xlu1 %47 }
  0x8f   :  { %v54_v14 = vmul.f32 %v42_v12, %v42_v12  ;;  %v52_v15 = vmul.f32 0.03125, %v48_v13  ;;  %v58_v25 = vsub.f32 %v25_v0, %v42_v12 }
  0x90   :  { %v40_v16 = vpop.xlane.xlu0 %39 }
  0x91   :  { %v56_v17 = vsub.f32 %v52_v15, %v54_v14  ;;  %v43_v18 = vmul.f32 0.03125, %v40_v16 }
  0x92   :  { %v51_v19 = vpop.xlane.xlu1 %50 }
  0x93   :  { %v60_v20 = vadd.f32 1e-05, %v56_v17  ;;  %v55_v21 = vmul.f32 %v43_v18, %v43_v18  ;;  %v53_v22 = vmul.f32 0.03125, %v51_v19  ;;  %v59_v29 = vsub.f32 %v26_v1, %v43_v18 }
  0x95   :  { %3673 = vrsqrt.f32 %v60_v20  ;;  %v57_v23 = vsub.f32 %v53_v22, %v55_v21 }
  0x97   :  { %v61_v24 = vadd.f32 1e-05, %v57_v23 }
  0x99   :  { %3675 = vrsqrt.f32 %v61_v24 }
  0xa2   :  { %v3674_v26 = vpop.eup %3673 }
  0xa3   :  { %v64_v27 = vmul.f32 %v3674_v26, %v58_v25 }
  0xa5   :  { %v70_v32 = vmul.f32 %v3340_v28, %v64_v27 }
  0xa6   :  { %v3676_v30 = vpop.eup %3675 }
  0xa7   :  { %v65_v31 = vmul.f32 %v3676_v30, %v59_v29  ;;  %v76_v35 = vadd.f32 %v3341_v33, %v70_v32 }
  0xa9   :  { %v71_v34 = vmul.f32 %v3340_v28, %v65_v31 }
  0xab   :  { %v77_v36 = vadd.f32 %v3341_v33, %v71_v34 }
  0xad   :  { %v78_v37 = vpack.c.bf16 %v77_v36, %v76_v35 }
  0xaf   :  { %3491 = vmatmul.mubr.msk.bf16.vlgmr.msra.gmra.mxu0 %vm34_vm0, %v78_v37 }
 0x16f   :  { %v3857_v38 = vpop.f32.mrf.mxu0 }
 0x171   :  { %v3492_v39 = vpop.f32.mrf.mxu0 }
 0x173   :  { %v3859_v40 = vpop.f32.mrf.mxu0 }
 0x174   :  { %167 = vrot.lane.b32.xlu1 %v3859_v40, %s3775_s8  ;;  %161 = vrot.lane.b32.xlu0 %v3859_v40, %s3776_s9 }
 0x175   :  { %v3493_v41 = vpop.f32.mrf.mxu0 }
 0x178   :  { %173 = vrot.lane.b32.xlu1 %v3859_v40, %s3777_s10  ;;  %143 = vrot.lane.b32.xlu0 %v3859_v40, %s3778_s11 }
 0x17c   :  { %179 = vrot.lane.b32.xlu1 %v3859_v40, %s3779_s12  ;;  %155 = vrot.lane.b32.xlu0 %v3859_v40, %s3780_s13 }
 0x180   :  { %149 = vrot.lane.b32.xlu1 %v3859_v40, %s3781_s14  ;;  %165 = vrot.lane.b32.xlu0 %v3857_v38, %s3775_s8  ;;  %s3793_s8 = smov [#allocation2]  }
 0x184   :  { %159 = vrot.lane.b32.xlu1 %v3857_v38, %s3776_s9  ;;  %177 = vrot.lane.b32.xlu0 %v3857_v38, %s3779_s12  ;;  %s3329_s9 = sshll.u32 %s3793_s8, 4  ;;  %s3330_s9 = int_to_ptr.vmem [resolvable:$true] %s3329_s9 }
 0x185   :  { %p3756_p1 = scmp.lt.s32.totalorder %s3330_s9, %s3330_s9 }
 0x188   :  { %171 = vrot.lane.b32.xlu1 %v3857_v38, %s3777_s10  ;;  %147 = vrot.lane.b32.xlu0 %v3857_v38, %s3781_s14 }
 0x18c   :  { %141 = vrot.lane.b32.xlu1 %v3857_v38, %s3778_s11 }
 0x190   :  { %153 = vrot.lane.b32.xlu1 %v3857_v38, %s3780_s13 }
 0x1e6   :  { %v3875_v45 = vpop.permute.xlu1 %167  ;;  %v3877_v46 = vpop.permute.xlu0 %161 }
 0x1e7   :  { %749 = vrot.lane.b32.xlu1 %v3875_v45, %s3783_s15  ;;  %745 = vrot.lane.b32.xlu0 %v3877_v46, %s3783_s15 }
 0x1ea   :  { %v3886_v51 = vpop.permute.xlu1 %173  ;;  %v3888_v52 = vpop.permute.xlu0 %143 }
 0x1eb   :  { %v351_v53 = vcombine.low %v3877_v46, %v3886_v51  ;;  %v352_v54 = vcombine.high %v3877_v46, %v3886_v51  ;;  %753 = vrot.lane.b32.xlu0 %v3886_v51, %s3783_s15 }
 0x1ed   :  { %v359_v0 = vrot.slane %v351_v53, %v3897_v56  ;;  %v366_v1 = vrot.slane %v352_v54, %v3897_v56 }
 0x1ee   :  { %v3899_v57 = vpop.permute.xlu1 %179  ;;  %v3901_v58 = vpop.permute.xlu0 %155 }
 0x1ef   :  { %v367_v59 = vcombine.low %v3875_v45, %v3899_v57  ;;  %v368_v60 = vcombine.high %v3875_v45, %v3899_v57  ;;  %v335_v61 = vcombine.low %v3888_v52, %v3901_v58  ;;  %v336_v62 = vcombine.high %v3888_v52, %v3901_v58  ;;  %757 = vrot.lane.b32.xlu1 %v3899_v57, %s3783_s15 }
 0x1f0   :  { %729 = vrot.lane.b32.xlu0 %v3859_v40, %s3783_s15 }
 0x1f1   :  { %v375_v2 = vrot.slane %v367_v59, %v3897_v56  ;;  %v382_v3 = vrot.slane %v368_v60, %v3897_v56  ;;  %v343_v17 = vrot.slane %v335_v61, %v3897_v56  ;;  %v350_v18 = vrot.slane %v336_v62, %v3897_v56 }
 0x1f2   :  { %v3922_v4 = vpop.permute.xlu1 %149  ;;  %v3924_v5 = vpop.permute.xlu0 %165 }
 0x1f3   :  { %v415_v6 = vcombine.low %v359_v0, %v375_v2  ;;  %v416_v7 = vcombine.high %v359_v0, %v375_v2  ;;  %v431_v8 = vcombine.low %v366_v1, %v382_v3  ;;  %v432_v10 = vcombine.high %v366_v1, %v382_v3  ;;  %733 = vrot.lane.b32.xlu1 %v3888_v52, %s3783_s15 }
 0x1f4   :  { %v319_v11 = vcombine.low %v3859_v40, %v3922_v4  ;;  %v320_v12 = vcombine.high %v3859_v40, %v3922_v4  ;;  %737 = vrot.lane.b32.xlu0 %v3922_v4, %s3783_s15 }
 0x1f5   :  { %v423_v13 = vrot.slane %v415_v6, %v3914_v63  ;;  %v430_v14 = vrot.slane %v416_v7, %v3914_v63  ;;  %v3937_v15 = vrot.slane %v431_v8, %v3914_v63  ;;  %v3940_v16 = vrot.slane %v432_v10, %v3914_v63 }
 0x1f6   :  { %v327_v19 = vrot.slane %v319_v11, %v3897_v56  ;;  %v334_v20 = vrot.slane %v320_v12, %v3897_v56  ;;  %v3946_v21 = vpop.permute.xlu1 %159  ;;  %v3948_v22 = vpop.permute.xlu0 %177 }
 0x1f7   :  { %v3354_v23 = vcombine.low %v423_v13, %v430_v14  ;;  %v3356_v24 = vcombine.high %v423_v13, %v430_v14  ;;  %v3358_v25 = vcombine.low %v3937_v15, %v3940_v16  ;;  %v3360_v26 = vcombine.high %v3937_v15, %v3940_v16  ;;  %741 = vrot.lane.b32.xlu1 %v3901_v58, %s3783_s15 }
 0x1f8   :  { %v383_v27 = vcombine.low %v327_v19, %v343_v17  ;;  %v384_v28 = vcombine.high %v327_v19, %v343_v17  ;;  %v399_v29 = vcombine.low %v334_v20, %v350_v18  ;;  %v400_v30 = vcombine.high %v334_v20, %v350_v18  ;;  %743 = vrot.lane.b32.xlu0 %v3946_v21, %s3783_s15 }
 0x1f9   :  { %v231_v31 = vcombine.low %v3924_v5, %v3948_v22  ;;  %v232_v32 = vcombine.high %v3924_v5, %v3948_v22  ;;  %v3963_v33 = vrot.slane %v3354_v23, %v3897_v56  ;;  %v3966_v34 = vrot.slane %v3356_v24, %v3897_v56 }
 0x1fa   :  { %v391_v35 = vrot.slane %v383_v27, %v3914_v63  ;;  %v398_v36 = vrot.slane %v384_v28, %v3914_v63  ;;  %v407_v37 = vrot.slane %v399_v29, %v3914_v63  ;;  %v414_v39 = vrot.slane %v400_v30, %v3914_v63  ;;  %v3972_v41 = vpop.permute.xlu1 %171  ;;  %v3974_v42 = vpop.permute.xlu0 %147 }
 0x1fb   :  { %v239_v43 = vrot.slane %v231_v31, %v3897_v56  ;;  %v246_v47 = vrot.slane %v232_v32, %v3897_v56  ;;  %v215_v48 = vcombine.low %v3946_v21, %v3972_v41  ;;  %v216_v49 = vcombine.high %v3946_v21, %v3972_v41  ;;  %747 = vrot.lane.b32.xlu1 %v3924_v5, %s3783_s15 }
 0x1fc   :  { %v3353_v53 = vcombine.low %v391_v35, %v398_v36  ;;  %v3355_v54 = vcombine.high %v391_v35, %v398_v36  ;;  %v3357_v55 = vcombine.low %v407_v37, %v414_v39  ;;  %v3359_v59 = vcombine.high %v407_v37, %v414_v39  ;;  %751 = vrot.lane.b32.xlu0 %v3972_v41, %s3783_s15 }
 0x1fd   :  { %v223_v60 = vrot.slane %v215_v48, %v3897_v56  ;;  %v230_v61 = vrot.slane %v216_v49, %v3897_v56  ;;  %v183_v62 = vcombine.low %v3857_v38, %v3974_v42  ;;  %v184_v0 = vcombine.high %v3857_v38, %v3974_v42 }
 0x1fe   :  { %v3992_v1 = vpop.permute.xlu1 %141  ;;  %v599_v2 = vrot.slane %v3353_v53, %v3897_v56  ;;  %v615_v3 = vrot.slane %v3355_v54, %v3897_v56  ;;  %v3997_v6 = vrot.slane %v3357_v55, %v3897_v56  ;;  %v4000_v7 = vrot.slane %v3359_v59, %v3897_v56 }
 0x1ff   :  { %v279_v8 = vcombine.low %v223_v60, %v239_v43  ;;  %v280_v10 = vcombine.high %v223_v60, %v239_v43  ;;  %v295_v11 = vcombine.low %v230_v61, %v246_v47  ;;  %v296_v12 = vcombine.high %v230_v61, %v246_v47  ;;  %755 = vrot.lane.b32.xlu1 %v3948_v22, %s3783_s15 }
 0x200   :  { %v191_v13 = vrot.slane %v183_v62, %v3897_v56  ;;  %v198_v14 = vrot.slane %v184_v0, %v3897_v56  ;;  %727 = vrot.lane.b32.xlu0 %v3857_v38, %s3783_s15  ;;  %v655_v17 = vcombine.low %v599_v2, %v615_v3  ;;  %v687_v18 = vcombine.low %v3997_v6, %v4000_v7 }
 0x201   :  { %v287_v19 = vrot.slane %v279_v8, %v3914_v63  ;;  %v294_v20 = vrot.slane %v280_v10, %v3914_v63  ;;  %v303_v23 = vrot.slane %v295_v11, %v3914_v63  ;;  %v310_v24 = vrot.slane %v296_v12, %v3914_v63 }
 0x202   :  { %v4014_v27 = vpop.permute.xlu1 %153  ;;  %v663_v28 = vrot.slane %v655_v17, %v3914_v63  ;;  %v695_v29 = vrot.slane %v687_v18, %v3914_v63  ;;  %v656_v30 = vcombine.high %v599_v2, %v615_v3  ;;  %v688_v31 = vcombine.high %v3997_v6, %v4000_v7 }
 0x203   :  { %v3346_v32 = vcombine.low %v287_v19, %v294_v20  ;;  %v3348_v35 = vcombine.high %v287_v19, %v294_v20  ;;  %v3350_v36 = vcombine.low %v303_v23, %v310_v24  ;;  %v3352_v37 = vcombine.high %v303_v23, %v310_v24  ;;  %731 = vrot.lane.b32.xlu1 %v3992_v1, %s3783_s15 }
 0x204   :  { %v199_v39 = vcombine.low %v3992_v1, %v4014_v27  ;;  %v200_v43 = vcombine.high %v3992_v1, %v4014_v27  ;;  %735 = vrot.lane.b32.xlu0 %v3974_v42, %s3783_s15  ;;  %v719_v47 = vcombine.low %v663_v28, %v695_v29  ;;  %v720_v48 = vcombine.high %v663_v28, %v695_v29 }
 0x205   :  { %v470_v49 = vrot.slane %v3346_v32, %v3897_v56  ;;  %v486_v53 = vrot.slane %v3348_v35, %v3897_v56  ;;  %v502_v54 = vrot.slane %v3350_v36, %v3897_v56  ;;  %v518_v55 = vrot.slane %v3352_v37, %v3897_v56 }
 0x206   :  { %v207_v59 = vrot.slane %v199_v39, %v3897_v56  ;;  %v214_v60 = vrot.slane %v200_v43, %v3897_v56  ;;  %v4034_v61 = vpack.c.bf16 %v720_v48, %v719_v47  ;;  %v670_v62 = vrot.slane %v656_v30, %v3914_v63 }
 0x207   :  { %739 = vrot.lane.b32.xlu1 %v4014_v27, %s3783_s15  ;;  %v535_v0 = vcombine.low %v470_v49, %v486_v53  ;;  %v567_v2 = vcombine.low %v502_v54, %v518_v55  ;;  %v536_v3 = vcombine.high %v470_v49, %v486_v53  ;;  %v568_v6 = vcombine.high %v502_v54, %v518_v55 }
 0x208   :  { %v247_v7 = vcombine.low %v191_v13, %v207_v59  ;;  %v248_v8 = vcombine.high %v191_v13, %v207_v59  ;;  %v263_v10 = vcombine.low %v198_v14, %v214_v60  ;;  %v264_v11 = vcombine.high %v198_v14, %v214_v60  ;;  %1321 = vrot.lane.b32.xlu0 %v3859_v40, %s3785_s16 }
 0x209   :  { %v543_v12 = vrot.slane %v535_v0, %v3914_v63  ;;  %v575_v17 = vrot.slane %v567_v2, %v3914_v63  ;;  %v550_v18 = vrot.slane %v536_v3, %v3914_v63  ;;  %v582_v19 = vrot.slane %v568_v6, %v3914_v63 }
 0x20a   :  { %v255_v20 = vrot.slane %v247_v7, %v3914_v63  ;;  %v262_v23 = vrot.slane %v248_v8, %v3914_v63  ;;  %v271_v13 = vrot.slane %v263_v10, %v3914_v63  ;;  %v278_v14 = vrot.slane %v264_v11, %v3914_v63 }
 0x20b   :  { %1339 = vrot.lane.b32.xlu1 %v3924_v5, %s3785_s16  ;;  %v587_v40 = vcombine.low %v543_v12, %v575_v17  ;;  %v588_v24 = vcombine.high %v543_v12, %v575_v17  ;;  %v589_v28 = vcombine.low %v550_v18, %v582_v19  ;;  %v590_v29 = vcombine.high %v550_v18, %v582_v19 }
 0x20c   :  { %1335 = vrot.lane.b32.xlu0 %v3946_v21, %s3785_s16  ;;  %v3345_v30 = vcombine.low %v255_v20, %v262_v23  ;;  %v3347_v32 = vcombine.high %v255_v20, %v262_v23  ;;  %v3349_v35 = vcombine.low %v271_v13, %v278_v14  ;;  %v3351_v36 = vcombine.high %v271_v13, %v278_v14 }
 0x20d   :  { %v4053_v37 = vpack.c.bf16 %v588_v24, %v587_v40  ;;  %v4055_v39 = vpack.c.bf16 %v590_v29, %v589_v28  ;;  %v702_v43 = vrot.slane %v688_v31, %v3914_v63  ;;  %v638_v5 = vrot.slane %v3358_v25, %v3897_v56 }
 0x20e   :  { %v463_v47 = vrot.slane %v3345_v30, %v3897_v56  ;;  %v479_v48 = vrot.slane %v3347_v32, %v3897_v56  ;;  %v495_v21 = vrot.slane %v3349_v35, %v3897_v56  ;;  %v511_v49 = vrot.slane %v3351_v36, %v3897_v56 }
 0x20f   :  { %1347 = vrot.lane.b32.xlu1 %v3948_v22, %s3785_s16  ;;  %v721_v53 = vcombine.low %v670_v62, %v702_v43  ;;  %v722_v54 = vcombine.high %v670_v62, %v702_v43  ;;  %v654_v31 = vrot.slane %v3360_v26, %v3897_v56  ;;  %v671_v25 = vcombine.low %v3963_v33, %v3966_v34 }
 0x210   :  { %1343 = vrot.lane.b32.xlu0 %v3972_v41, %s3785_s16  ;;  %v519_v55 = vcombine.low %v463_v47, %v479_v48  ;;  %v520_v59 = vcombine.high %v463_v47, %v479_v48  ;;  %v551_v60 = vcombine.low %v495_v21, %v511_v49  ;;  %v552_v0 = vcombine.high %v495_v21, %v511_v49 }
 0x211   :  { %v4076_v2 = vpack.c.bf16 %v722_v54, %v721_v53  ;;  %v679_v22 = vrot.slane %v671_v25, %v3914_v63  ;;  %v703_v62 = vcombine.low %v638_v5, %v654_v31  ;;  %v672_v3 = vcombine.high %v3963_v33, %v3966_v34 }
 0x212   :  { %v527_v15 = vrot.slane %v519_v55, %v3914_v63  ;;  %v559_v16 = vrot.slane %v551_v60, %v3914_v63  ;;  %v534_v26 = vrot.slane %v520_v59, %v3914_v63  ;;  %v566_v41 = vrot.slane %v552_v0, %v3914_v63 }
 0x213   :  { %1323 = vrot.lane.b32.xlu1 %v3992_v1, %s3785_s16  ;;  %v711_v6 = vrot.slane %v703_v62, %v3914_v63  ;;  %v686_v7 = vrot.slane %v672_v3, %v3914_v63  ;;  %v704_v8 = vcombine.high %v638_v5, %v654_v31 }
 0x214   :  { %1319 = vrot.lane.b32.xlu0 %v3857_v38, %s3785_s16  ;;  %v583_v33 = vcombine.low %v527_v15, %v559_v16  ;;  %v584_v34 = vcombine.high %v527_v15, %v559_v16  ;;  %v585_v10 = vcombine.low %v534_v26, %v566_v41  ;;  %v586_v11 = vcombine.high %v534_v26, %v566_v41 }
 0x215   :  { %v723_v12 = vcombine.low %v679_v22, %v711_v6  ;;  %v724_v17 = vcombine.high %v679_v22, %v711_v6  ;;  %v718_v18 = vrot.slane %v704_v8, %v3914_v63 }
 0x216   :  { %v1911_v19 = vpack.c.bf16 %v584_v34, %v583_v33  ;;  %v4092_v20 = vpack.c.bf16 %v586_v11, %v585_v10 }
 0x217   :  { %1327 = vrot.lane.b32.xlu1 %v3974_v42, %s3785_s16  ;;  %v4096_v1 = vpack.c.bf16 %v724_v17, %v723_v12  ;;  %v725_v23 = vcombine.low %v686_v7, %v718_v18  ;;  %v726_v13 = vcombine.high %v686_v7, %v718_v18 }
 0x218   :  { %3510 = vmatprep.mubr.msk.bf16.mxu1 %vm1927_vm2, %v1911_v19  ;;  %1337 = vrot.lane.b32.xlu0 %v3877_v46, %s3785_s16 }
 0x219   :  { %v4101_v38 = vpack.c.bf16 %v726_v13, %v725_v23 }
 0x21b   :  { %1341 = vrot.lane.b32.xlu1 %v3875_v45, %s3785_s16 }
 0x21c   :  { %1345 = vrot.lane.b32.xlu0 %v3886_v51, %s3785_s16 }
 0x21f   :  { %1349 = vrot.lane.b32.xlu1 %v3899_v57, %s3785_s16 }
 0x220   :  { %1329 = vrot.lane.b32.xlu0 %v3922_v4, %s3785_s16 }
 0x223   :  { %1325 = vrot.lane.b32.xlu1 %v3888_v52, %s3785_s16 }
 0x227   :  { %1333 = vrot.lane.b32.xlu1 %v3901_v58, %s3785_s16 }
 0x259   :  { %v746_v46 = vpop.permute.xlu0 %745  ;;  %v750_v42 = vpop.permute.xlu1 %749 }
 0x25d   :  { %v754_v14 = vpop.permute.xlu0 %753 }
 0x25e   :  { %v943_v40 = vcombine.low %v746_v46, %v754_v14  ;;  %v944_v45 = vcombine.high %v746_v46, %v754_v14 }
 0x260   :  { %v951_v57 = vrot.slane %v943_v40, %v3897_v56  ;;  %v958_v30 = vrot.slane %v944_v45, %v3897_v56 }
 0x261   :  { %v758_v24 = vpop.permute.xlu1 %757 }
 0x262   :  { %v959_v28 = vcombine.low %v750_v42, %v758_v24  ;;  %v960_v51 = vcombine.high %v750_v42, %v758_v24  ;;  %v730_v29 = vpop.permute.xlu0 %729 }
 0x264   :  { %v967_v4 = vrot.slane %v959_v28, %v3897_v56  ;;  %v974_v52 = vrot.slane %v960_v51, %v3897_v56 }
 0x265   :  { %v734_v32 = vpop.permute.xlu1 %733 }
 0x266   :  { %v1007_v35 = vcombine.low %v951_v57, %v967_v4  ;;  %v1008_v58 = vcombine.high %v951_v57, %v967_v4  ;;  %v1023_v36 = vcombine.low %v958_v30, %v974_v52  ;;  %v1024_v43 = vcombine.high %v958_v30, %v974_v52  ;;  %v738_v5 = vpop.permute.xlu0 %737 }
 0x267   :  { %v911_v53 = vcombine.low %v730_v29, %v738_v5  ;;  %v912_v54 = vcombine.high %v730_v29, %v738_v5 }
 0x268   :  { %v1015_v47 = vrot.slane %v1007_v35, %v3914_v63  ;;  %v1022_v48 = vrot.slane %v1008_v58, %v3914_v63  ;;  %v1031_v21 = vrot.slane %v1023_v36, %v3914_v63  ;;  %v1038_v49 = vrot.slane %v1024_v43, %v3914_v63 }
 0x269   :  { %v742_v31 = vpop.permute.xlu1 %741  ;;  %v919_v41 = vrot.slane %v911_v53, %v3897_v56  ;;  %v926_v6 = vrot.slane %v912_v54, %v3897_v56 }
 0x26a   :  { %v3370_v25 = vcombine.low %v1015_v47, %v1022_v48  ;;  %v3372_v55 = vcombine.high %v1015_v47, %v1022_v48  ;;  %v3374_v59 = vcombine.low %v1031_v21, %v1038_v49  ;;  %v3376_v60 = vcombine.high %v1031_v21, %v1038_v49  ;;  %v744_v0 = vpop.permute.xlu0 %743 }
 0x26b   :  { %v927_v22 = vcombine.low %v734_v32, %v742_v31  ;;  %v928_v62 = vcombine.high %v734_v32, %v742_v31 }
 0x26c   :  { %v1198_v3 = vrot.slane %v3370_v25, %v3897_v56  ;;  %v1214_v15 = vrot.slane %v3372_v55, %v3897_v56  ;;  %v1230_v16 = vrot.slane %v3374_v59, %v3897_v56  ;;  %v1246_v26 = vrot.slane %v3376_v60, %v3897_v56 }
 0x26d   :  { %v935_v7 = vrot.slane %v927_v22, %v3897_v56  ;;  %v942_v8 = vrot.slane %v928_v62, %v3897_v56  ;;  %v748_v33 = vpop.permute.xlu1 %747 }
 0x26e   :  { %v752_v34 = vpop.permute.xlu0 %751  ;;  %v1264_v10 = vcombine.high %v1198_v3, %v1214_v15  ;;  %v1296_v11 = vcombine.high %v1230_v16, %v1246_v26  ;;  %v1263_v52 = vcombine.low %v1198_v3, %v1214_v15  ;;  %v1295_v32 = vcombine.low %v1230_v16, %v1246_v26 }
 0x26f   :  { %v975_v12 = vcombine.low %v919_v41, %v935_v7  ;;  %v976_v17 = vcombine.high %v919_v41, %v935_v7  ;;  %v991_v18 = vcombine.low %v926_v6, %v942_v8  ;;  %v992_v19 = vcombine.high %v926_v6, %v942_v8 }
 0x270   :  { %v807_v23 = vcombine.low %v744_v0, %v752_v34  ;;  %v808_v13 = vcombine.high %v744_v0, %v752_v34  ;;  %v1278_v46 = vrot.slane %v1264_v10, %v3914_v63  ;;  %v1310_v42 = vrot.slane %v1296_v11, %v3914_v63 }
 0x271   :  { %v983_v14 = vrot.slane %v975_v12, %v3914_v63  ;;  %v990_v40 = vrot.slane %v976_v17, %v3914_v63  ;;  %v999_v45 = vrot.slane %v991_v18, %v3914_v63  ;;  %v1006_v24 = vrot.slane %v992_v19, %v3914_v63  ;;  %v756_v28 = vpop.permute.xlu1 %755 }
 0x272   :  { %v823_v51 = vcombine.low %v748_v33, %v756_v28  ;;  %v824_v29 = vcombine.high %v748_v33, %v756_v28  ;;  %v728_v57 = vpop.permute.xlu0 %727  ;;  %v815_v30 = vrot.slane %v807_v23, %v3897_v56  ;;  %v822_v4 = vrot.slane %v808_v13, %v3897_v56 }
 0x273   :  { %v1317_v36 = vcombine.low %v1278_v46, %v1310_v42  ;;  %v1318_v43 = vcombine.high %v1278_v46, %v1310_v42  ;;  %v3369_v5 = vcombine.low %v983_v14, %v990_v40  ;;  %v3371_v47 = vcombine.high %v983_v14, %v990_v40 }
 0x274   :  { %v831_v35 = vrot.slane %v823_v51, %v3897_v56  ;;  %v838_v58 = vrot.slane %v824_v29, %v3897_v56  ;;  %v3373_v48 = vcombine.low %v999_v45, %v1006_v24  ;;  %v3375_v21 = vcombine.high %v999_v45, %v1006_v24 }
 0x275   :  { %v732_v49 = vpop.permute.xlu1 %731  ;;  %v1926_v0 = vpack.c.bf16 %v1318_v43, %v1317_v36  ;;  %v1271_v22 = vrot.slane %v1263_v52, %v3914_v63  ;;  %v1191_v26 = vrot.slane %v3369_v5, %v3897_v56  ;;  %v1207_v41 = vrot.slane %v3371_v47, %v3897_v56 }
 0x276   :  { %v871_v53 = vcombine.low %v815_v30, %v831_v35  ;;  %v872_v54 = vcombine.high %v815_v30, %v831_v35  ;;  %v887_v31 = vcombine.low %v822_v4, %v838_v58  ;;  %v888_v25 = vcombine.high %v822_v4, %v838_v58  ;;  %v736_v55 = vpop.permute.xlu0 %735 }
 0x277   :  { %v775_v59 = vcombine.low %v728_v57, %v736_v55  ;;  %v776_v60 = vcombine.high %v728_v57, %v736_v55  ;;  %3594 = vmatprep.subr.msk.bf16.mxu1 %vm1927_vm2, %v1926_v0  ;;  %v1974_v6 = vsel %vm1927_vm2, %v1926_v0, 0  ;;  %v1303_v7 = vrot.slane %v1295_v32, %v3914_v63 }
 0x278   :  { %v879_v62 = vrot.slane %v871_v53, %v3914_v63  ;;  %v886_v3 = vrot.slane %v872_v54, %v3914_v63  ;;  %v895_v15 = vrot.slane %v887_v31, %v3914_v63  ;;  %v902_v16 = vrot.slane %v888_v25, %v3914_v63  ;;  %3495 = vmatpush3.bf16.xpose.msra.mxu1 %v1974_v6 }
 0x279   :  { %v740_v8 = vpop.permute.xlu1 %739  ;;  %v1223_v33 = vrot.slane %v3373_v48, %v3897_v56  ;;  %v1239_v34 = vrot.slane %v3375_v21, %v3897_v56  ;;  %v1315_v17 = vcombine.low %v1271_v22, %v1303_v7  ;;  %v1316_v18 = vcombine.high %v1271_v22, %v1303_v7 }
 0x27a   :  { %v3362_v10 = vcombine.low %v879_v62, %v886_v3  ;;  %v3364_v11 = vcombine.high %v879_v62, %v886_v3  ;;  %v4153_v12 = vpop.permute.xlu0 %1321  ;;  %v791_v19 = vcombine.low %v732_v49, %v740_v8  ;;  %v792_v23 = vcombine.high %v732_v49, %v740_v8 }
 0x27b   :  { %v3366_v13 = vcombine.low %v895_v15, %v902_v16  ;;  %v3368_v46 = vcombine.high %v895_v15, %v902_v16  ;;  %v783_v42 = vrot.slane %v775_v59, %v3897_v56  ;;  %v790_v14 = vrot.slane %v776_v60, %v3897_v56 }
 0x27c   :  { %v1925_v40 = vpack.c.bf16 %v1316_v18, %v1315_v17  ;;  %v799_v45 = vrot.slane %v791_v19, %v3897_v56  ;;  %v806_v24 = vrot.slane %v792_v23, %v3897_v56  ;;  %v1248_v51 = vcombine.high %v1191_v26, %v1207_v41 }
 0x27d   :  { %v1340_v28 = vpop.permute.xlu1 %1339  ;;  %v4160_v29 = vrot.slane %v3362_v10, %v3897_v56  ;;  %v4163_v57 = vrot.slane %v3364_v11, %v3897_v56  ;;  %v1280_v4 = vcombine.high %v1223_v33, %v1239_v34  ;;  %v1247_v52 = vcombine.low %v1191_v26, %v1207_v41 }
 0x27e   :  { %v1336_v30 = vpop.permute.xlu0 %1335  ;;  %3595 = vmatprep.subr.msk.bf16.mxu1 %vm1927_vm2, %v1925_v40  ;;  %v839_v32 = vcombine.low %v783_v42, %v799_v45  ;;  %v840_v35 = vcombine.high %v783_v42, %v799_v45  ;;  %v855_v58 = vcombine.low %v790_v14, %v806_v24  ;;  %v856_v36 = vcombine.high %v790_v14, %v806_v24 }
 0x27f   :  { %v1971_v43 = vsel %vm1927_vm2, %v1925_v40, 0  ;;  %v1262_v5 = vrot.slane %v1248_v51, %v3914_v63  ;;  %v1294_v47 = vrot.slane %v1280_v4, %v3914_v63  ;;  %v1279_v48 = vcombine.low %v1223_v33, %v1239_v34 }
 0x280   :  { %v847_v21 = vrot.slane %v839_v32, %v3914_v63  ;;  %v854_v49 = vrot.slane %v840_v35, %v3914_v63  ;;  %v863_v53 = vrot.slane %v855_v58, %v3914_v63  ;;  %v870_v54 = vrot.slane %v856_v36, %v3914_v63  ;;  %3497 = vmatpush3.bf16.xpose.msra.mxu1 %v1971_v43 }
 0x281   :  { %v1348_v31 = vpop.permute.xlu1 %1347  ;;  %v1313_v25 = vcombine.low %v1262_v5, %v1294_v47  ;;  %v1314_v55 = vcombine.high %v1262_v5, %v1294_v47  ;;  %v1094_v22 = vrot.slane %v3366_v13, %v3897_v56  ;;  %v1110_v62 = vrot.slane %v3368_v46, %v3897_v56 }
 0x282   :  { %v1415_v59 = vcombine.low %v1340_v28, %v1348_v31  ;;  %v1416_v60 = vcombine.high %v1340_v28, %v1348_v31  ;;  %v1344_v0 = vpop.permute.xlu0 %1343  ;;  %v3361_v3 = vcombine.low %v847_v21, %v854_v49  ;;  %v1128_v15 = vcombine.high %v4160_v29, %v4163_v57 }
 0x283   :  { %v1924_v16 = vpack.c.bf16 %v1314_v55, %v1313_v25  ;;  %v1399_v41 = vcombine.low %v1336_v30, %v1344_v0  ;;  %v1255_v6 = vrot.slane %v1247_v52, %v3914_v63  ;;  %v3363_v7 = vcombine.high %v847_v21, %v854_v49 }
 0x284   :  { %v1423_v26 = vrot.slane %v1415_v59, %v3897_v56  ;;  %v3365_v8 = vcombine.low %v863_v53, %v870_v54  ;;  %v3367_v33 = vcombine.high %v863_v53, %v870_v54  ;;  %v1430_v10 = vrot.slane %v1416_v60, %v3897_v56 }
 0x285   :  { %v4179_v34 = vpop.permute.xlu1 %1323  ;;  %3596 = vmatprep.subr.msk.bf16.mxu1 %vm1927_vm2, %v1924_v16  ;;  %v1400_v11 = vcombine.high %v1336_v30, %v1344_v0  ;;  %v1407_v17 = vrot.slane %v1399_v41, %v3897_v56  ;;  %v1287_v19 = vrot.slane %v1279_v48, %v3914_v63  ;;  %v4188_v23 = vrot.slane %v3361_v3, %v3897_v56 }
 0x286   :  { %v4184_v18 = vpop.permute.xlu0 %1319  ;;  %v1968_v13 = vsel %vm1927_vm2, %v1924_v16, 0  ;;  %v1142_v46 = vrot.slane %v1128_v15, %v3914_v63  ;;  %v1160_v42 = vcombine.high %v1094_v22, %v1110_v62  ;;  %v1127_v4 = vcombine.low %v4160_v29, %v4163_v57 }
 0x287   :  { %v1414_v14 = vrot.slane %v1400_v11, %v3897_v56  ;;  %v1463_v40 = vcombine.low %v1407_v17, %v1423_v26  ;;  %v1464_v45 = vcombine.high %v1407_v17, %v1423_v26  ;;  %v1311_v24 = vcombine.low %v1255_v6, %v1287_v19 }
 0x288   :  { %v1312_v28 = vcombine.high %v1255_v6, %v1287_v19  ;;  %v1174_v30 = vrot.slane %v1160_v42, %v3914_v63  ;;  %v1159_v52 = vcombine.low %v1094_v22, %v1110_v62  ;;  %v4199_v32 = vrot.slane %v3363_v7, %v3897_v56  ;;  %3499 = vmatpush3.bf16.xpose.msra.mxu1 %v1968_v13 }
 0x289   :  { %v4193_v51 = vpop.permute.xlu1 %1327  ;;  %v1471_v35 = vrot.slane %v1463_v40, %v3914_v63  ;;  %v1479_v58 = vcombine.low %v1414_v14, %v1430_v10  ;;  %v1480_v36 = vcombine.high %v1414_v14, %v1430_v10  ;;  %v1478_v5 = vrot.slane %v1464_v45, %v3914_v63 }
 0x28a   :  { %v1338_v43 = vpop.permute.xlu0 %1337  ;;  %v1923_v47 = vpack.c.bf16 %v1312_v28, %v1311_v24  ;;  %v1367_v48 = vcombine.low %v4184_v18, %v4193_v51  ;;  %v1368_v21 = vcombine.high %v4184_v18, %v4193_v51  ;;  %v4208_v29 = vrot.slane %v3365_v8, %v3897_v56 }
 0x28b   :  { %v4211_v57 = vrot.slane %v3367_v33, %v3897_v56  ;;  %v1487_v49 = vrot.slane %v1479_v58, %v3914_v63  ;;  %v1494_v53 = vrot.slane %v1480_v36, %v3914_v63  ;;  %v1181_v31 = vcombine.low %v1142_v46, %v1174_v30 }
 0x28c   :  { %3597 = vmatprep.subr.msk.bf16.mxu1 %vm1927_vm2, %v1923_v47  ;;  %v1182_v25 = vcombine.high %v1142_v46, %v1174_v30  ;;  %v1135_v55 = vrot.slane %v1127_v4, %v3914_v63  ;;  %v1167_v59 = vrot.slane %v1159_v52, %v3914_v63  ;;  %v3378_v0 = vcombine.low %v1471_v35, %v1478_v5 }
 0x28d   :  { %v1342_v54 = vpop.permute.xlu1 %1341  ;;  %v3380_v22 = vcombine.high %v1471_v35, %v1478_v5  ;;  %v3382_v62 = vcombine.low %v1487_v49, %v1494_v53  ;;  %v1965_v3 = vsel %vm1927_vm2, %v1923_v47, 0  ;;  %v3384_v15 = vcombine.high %v1487_v49, %v1494_v53 }
 0x28e   :  { %v1346_v60 = vpop.permute.xlu0 %1345  ;;  %v1112_v41 = vcombine.high %v4188_v23, %v4199_v32  ;;  %v1922_v6 = vpack.c.bf16 %v1182_v25, %v1181_v31  ;;  %v1179_v8 = vcombine.low %v1135_v55, %v1167_v59  ;;  %v1180_v33 = vcombine.high %v1135_v55, %v1167_v59 }
 0x28f   :  { %v1535_v16 = vcombine.low %v1338_v43, %v1346_v60  ;;  %v1536_v26 = vcombine.high %v1338_v43, %v1346_v60  ;;  %v1144_v10 = vcombine.high %v4208_v29, %v4211_v57  ;;  %v4224_v13 = vrot.slane %v3378_v0, %v3897_v56 }
 0x290   :  { %3501 = vmatpush3.bf16.xpose.msra.mxu1 %v1965_v3  ;;  %v4227_v46 = vrot.slane %v3380_v22, %v3897_v56  ;;  %v1126_v42 = vrot.slane %v1112_v41, %v3914_v63  ;;  %v4237_v30 = vrot.slane %v3382_v62, %v3897_v56  ;;  %v4240_v4 = vrot.slane %v3384_v15, %v3897_v56 }
 0x291   :  { %v1350_v7 = vpop.permute.xlu1 %1349  ;;  %3598 = vmatprep.subr.msk.bf16.mxu1 %vm1927_vm2, %v1922_v6  ;;  %v1158_v14 = vrot.slane %v1144_v10, %v3914_v63  ;;  %v1543_v40 = vrot.slane %v1535_v16, %v3897_v56  ;;  %v1550_v45 = vrot.slane %v1536_v26, %v3897_v56  ;;  %v1921_v58 = vpack.c.bf16 %v1180_v33, %v1179_v8 }
 0x292   :  { %v1551_v11 = vcombine.low %v1342_v54, %v1350_v7  ;;  %v1552_v17 = vcombine.high %v1342_v54, %v1350_v7  ;;  %v1330_v19 = vpop.permute.xlu0 %1329  ;;  %v1962_v53 = vsel %vm1927_vm2, %v1922_v6, 0  ;;  %v1143_v3 = vcombine.low %v4208_v29, %v4211_v57 }
 0x293   :  { %v1503_v52 = vcombine.low %v4153_v12, %v1330_v19  ;;  %v1504_v49 = vcombine.high %v4153_v12, %v1330_v19  ;;  %v1177_v54 = vcombine.low %v1126_v42, %v1158_v14  ;;  %v1178_v31 = vcombine.high %v1126_v42, %v1158_v14 }
 0x294   :  { %v1559_v24 = vrot.slane %v1551_v11, %v3897_v56  ;;  %v1566_v28 = vrot.slane %v1552_v17, %v3897_v56  ;;  %v1959_v62 = vsel %vm1927_vm2, %v1921_v58, 0  ;;  %v1111_v12 = vcombine.low %v4188_v23, %v4199_v32 }
 0x295   :  { %v1326_v35 = vpop.permute.xlu1 %1325  ;;  %v1511_v0 = vrot.slane %v1503_v52, %v3897_v56  ;;  %v1518_v6 = vrot.slane %v1504_v49, %v3897_v56  ;;  %v1920_v33 = vpack.c.bf16 %v1178_v31, %v1177_v54  ;;  %v1151_v19 = vrot.slane %v1143_v3, %v3914_v63 }
 0x296   :  { %v1599_v36 = vcombine.low %v1543_v40, %v1559_v24  ;;  %v1600_v43 = vcombine.high %v1543_v40, %v1559_v24  ;;  %v1615_v5 = vcombine.low %v1550_v45, %v1566_v28  ;;  %v1616_v47 = vcombine.high %v1550_v45, %v1566_v28 }
 0x297   :  { %v1119_v17 = vrot.slane %v1111_v12, %v3914_v63 }
 0x298   :  { %v1607_v25 = vrot.slane %v1599_v36, %v3914_v63  ;;  %v1614_v55 = vrot.slane %v1600_v43, %v3914_v63  ;;  %v1623_v59 = vrot.slane %v1615_v5, %v3914_v63  ;;  %v1630_v60 = vrot.slane %v1616_v47, %v3914_v63  ;;  %3503 = vmatpush3.bf16.xpose.msra.mxu1 %v1962_v53 }
 0x299   :  { %v1334_v22 = vpop.permute.xlu1 %1333  ;;  %3599 = vmatprep.subr.msk.bf16.mxu1 %vm1927_vm2, %v1921_v58 }
 0x29a   :  { %v3386_v15 = vcombine.low %v1607_v25, %v1614_v55  ;;  %v3388_v16 = vcombine.high %v1607_v25, %v1614_v55  ;;  %v3390_v26 = vcombine.low %v1623_v59, %v1630_v60  ;;  %v3392_v41 = vcombine.high %v1623_v59, %v1630_v60 }
 0x29b   :  { %v1519_v7 = vcombine.low %v1326_v35, %v1334_v22  ;;  %v1520_v8 = vcombine.high %v1326_v35, %v1334_v22 }
 0x29c   :  { %v1790_v10 = vrot.slane %v3386_v15, %v3897_v56  ;;  %v1806_v11 = vrot.slane %v3388_v16, %v3897_v56  ;;  %v1822_v23 = vrot.slane %v3390_v26, %v3897_v56  ;;  %v1838_v32 = vrot.slane %v3392_v41, %v3897_v56 }
 0x29d   :  { %v1527_v29 = vrot.slane %v1519_v7, %v3897_v56  ;;  %v1534_v57 = vrot.slane %v1520_v8, %v3897_v56  ;;  %v1175_v15 = vcombine.low %v1119_v17, %v1151_v19  ;;  %v1176_v16 = vcombine.high %v1119_v17, %v1151_v19 }
 0x29e   :  { %v1856_v42 = vcombine.high %v1790_v10, %v1806_v11  ;;  %v1888_v14 = vcombine.high %v1822_v23, %v1838_v32  ;;  %v1855_v40 = vcombine.low %v1790_v10, %v1806_v11  ;;  %v1887_v45 = vcombine.low %v1822_v23, %v1838_v32 }
 0x29f   :  { %v1567_v24 = vcombine.low %v1511_v0, %v1527_v29  ;;  %v1568_v28 = vcombine.high %v1511_v0, %v1527_v29  ;;  %v1583_v52 = vcombine.low %v1518_v6, %v1534_v57  ;;  %v1584_v35 = vcombine.high %v1518_v6, %v1534_v57 }
 0x2a0   :  { %v1870_v58 = vrot.slane %v1856_v42, %v3914_v63  ;;  %v1902_v36 = vrot.slane %v1888_v14, %v3914_v63  ;;  %v1863_v43 = vrot.slane %v1855_v40, %v3914_v63  ;;  %v1895_v5 = vrot.slane %v1887_v45, %v3914_v63  ;;  %3505 = vmatpush3.bf16.xpose.msra.mxu1 %v1959_v62 }
 0x2a1   :  { %v1575_v47 = vrot.slane %v1567_v24, %v3914_v63  ;;  %v1582_v49 = vrot.slane %v1568_v28, %v3914_v63  ;;  %v1591_v53 = vrot.slane %v1583_v52, %v3914_v63  ;;  %v1598_v54 = vrot.slane %v1584_v35, %v3914_v63  ;;  %3600 = vmatprep.subr.msk.bf16.mxu1 %vm1927_vm2, %v1920_v33 }
 0x2a2   :  { %v1909_v31 = vcombine.low %v1870_v58, %v1902_v36  ;;  %v1910_v25 = vcombine.high %v1870_v58, %v1902_v36  ;;  %v1907_v55 = vcombine.low %v1863_v43, %v1895_v5  ;;  %v1908_v59 = vcombine.high %v1863_v43, %v1895_v5 }
 0x2a3   :  { %v3385_v60 = vcombine.low %v1575_v47, %v1582_v49  ;;  %v3387_v0 = vcombine.high %v1575_v47, %v1582_v49  ;;  %v3389_v22 = vcombine.low %v1591_v53, %v1598_v54  ;;  %v3391_v12 = vcombine.high %v1591_v53, %v1598_v54 }
 0x2a4   :  { %v2268_v3 = vpack.c.bf16 %v1910_v25, %v1909_v31  ;;  %v2267_v7 = vpack.c.bf16 %v1908_v59, %v1907_v55  ;;  %v1720_v8 = vcombine.high %v4224_v13, %v4227_v46  ;;  %v1752_v10 = vcombine.high %v4237_v30, %v4240_v4 }
 0x2a5   :  { %v1783_v26 = vrot.slane %v3385_v60, %v3897_v56  ;;  %v1799_v41 = vrot.slane %v3387_v0, %v3897_v56  ;;  %v1815_v6 = vrot.slane %v3389_v22, %v3897_v56  ;;  %v1831_v62 = vrot.slane %v3391_v12, %v3897_v56 }
 0x2a6   :  { %3526 = vmatprep.subr.bf16.mxu0 %v2268_v3  ;;  %v1956_v57 = vsel %vm1927_vm2, %v1920_v33, 0  ;;  %v1919_v17 = vpack.c.bf16 %v1176_v16, %v1175_v15  ;;  %v1734_v45 = vrot.slane %v1720_v8, %v3914_v63  ;;  %v1766_v24 = vrot.slane %v1752_v10, %v3914_v63 }
 0x2a7   :  { %3527 = vmatpush3.bf16.msra.mxu0 %v2268_v3  ;;  %v1840_v11 = vcombine.high %v1783_v26, %v1799_v41  ;;  %v1872_v23 = vcombine.high %v1815_v6, %v1831_v62  ;;  %v1839_v32 = vcombine.low %v1783_v26, %v1799_v41  ;;  %v1871_v29 = vcombine.low %v1815_v6, %v1831_v62 }
 0x2a8   :  { %3528 = vmatprep.subr.bf16.mxu0 %v2267_v7  ;;  %3507 = vmatpush3.bf16.xpose.msra.mxu1 %v1956_v57  ;;  %v1719_v28 = vcombine.low %v4224_v13, %v4227_v46  ;;  %v1751_v33 = vcombine.low %v4237_v30, %v4240_v4  ;;  %v1773_v5 = vcombine.low %v1734_v45, %v1766_v24  ;;  %v1953_v13 = vsel %vm1927_vm2, %v1919_v17, 0 }
 0x2a9   :  { %v1854_v19 = vrot.slane %v1840_v11, %v3914_v63  ;;  %v1886_v42 = vrot.slane %v1872_v23, %v3914_v63  ;;  %v1847_v14 = vrot.slane %v1839_v32, %v3914_v63  ;;  %v1879_v40 = vrot.slane %v1871_v29, %v3914_v63  ;;  %3601 = vmatprep.subr.msk.bf16.mxu1 %vm1927_vm2, %v1919_v17 }
 0x2aa   :  { %v1774_v49 = vcombine.high %v1734_v45, %v1766_v24  ;;  %v1727_v53 = vrot.slane %v1719_v28, %v3914_v63  ;;  %v1759_v54 = vrot.slane %v1751_v33, %v3914_v63  ;;  %v2078_v0 = vadd.s32 32, %v3884_v50 }
 0x2ab   :  { %3529 = vmatpush3.bf16.msra.mxu0 %v2267_v7  ;;  %v1905_v52 = vcombine.low %v1854_v19, %v1886_v42  ;;  %v1906_v35 = vcombine.high %v1854_v19, %v1886_v42  ;;  %v1903_v58 = vcombine.low %v1847_v14, %v1879_v40  ;;  %v1904_v36 = vcombine.high %v1847_v14, %v1879_v40 }
 0x2ac   :  { %v2264_v46 = vpack.c.bf16 %v1774_v49, %v1773_v5  ;;  %v1771_v30 = vcombine.low %v1727_v53, %v1759_v54  ;;  %v1772_v4 = vcombine.high %v1727_v53, %v1759_v54  ;;  %v2096_v15 = vshra.s32 %v2078_v0, 3 }
 0x2ad   :  { %v2266_v43 = vpack.c.bf16 %v1906_v35, %v1905_v52  ;;  %v2265_v47 = vpack.c.bf16 %v1904_v36, %v1903_v58  ;;  %v2080_v16 = vadd.s32 48, %v3884_v50  ;;  %v2081_v8 = vadd.s32 56, %v3884_v50 }
 0x2ae   :  { %v2263_v31 = vpack.c.bf16 %v1772_v4, %v1771_v30  ;;  %v2082_v29 = vadd.s32 64, %v3884_v50  ;;  %v2084_v14 = vadd.s32 80, %v3884_v50  ;;  %v2086_v33 = vadd.s32 96, %v3884_v50 }
 0x2af   :  { %3530 = vmatprep.subr.bf16.mxu0 %v2266_v43  ;;  %v2098_v7 = vshra.s32 %v2080_v16, 3  ;;  %v2099_v32 = vshra.s32 %v2081_v8, 3  ;;  %v2088_v36 = vadd.s32 112, %v3884_v50  ;;  %v2079_v53 = vadd.s32 40, %v3884_v50 }
 0x2b0   :  { %3531 = vmatpush3.bf16.msra.mxu0 %v2266_v43  ;;  %3509 = vmatpush3.bf16.xpose.msra.mxu1 %v1953_v13  ;;  %v2100_v42 = vshra.s32 %v2082_v29, 3  ;;  %v2102_v28 = vshra.s32 %v2084_v14, 3  ;;  %v2104_v58 = vshra.s32 %v2086_v33, 3  ;;  %v2083_v13 = vadd.s32 72, %v3884_v50 }
 0x2b1   :  { %3532 = vmatprep.subr.bf16.mxu0 %v2265_v47  ;;  %3574 = vmatprep.subr.bf16.mxu1 %v3773_v9  ;;  %v2097_v54 = vshra.s32 %v2079_v53, 3  ;;  %v2085_v30 = vadd.s32 88, %v3884_v50 }
 0x2b4   :  { %3533 = vmatpush3.bf16.msra.mxu0 %v2265_v47  ;;  %v2106_v47 = vshra.s32 %v2088_v36, 3 }
 0x2b5   :  { %3534 = vmatprep.subr.bf16.mxu0 %v2264_v46 }
 0x2b7   :  { %3511 = vmatmul.mubr.msk.bf16.vlgmr.msra.gmra.mxu1 %vm1927_vm2, %v4092_v20  ;;  %v2091_v20 = vand.u32 127, %v188_v44 }
 0x2b8   :  { %3535 = vmatpush3.bf16.msra.mxu0 %v2264_v46  ;;  %3514 = vmatprep.mubr.msk.bf16.mxu1 %vm1927_vm2, %v4053_v37  ;;  %v2076_v37 = vadd.s32 16, %v3884_v50  ;;  %v2101_v46 = vshra.s32 %v2083_v13, 3 }
 0x2b9   :  { %3536 = vmatprep.subr.bf16.mxu0 %v2263_v31  ;;  %v4316_v25 = vshra.s32 %v2091_v20, 3 }
 0x2bb   :  { %vm2113_vm7 = vcmp.eq.s32.totalorder %v2096_v15, %v4316_v25  ;;  %vm2115_vm8 = vcmp.eq.s32.totalorder %v2098_v7, %v4316_v25  ;;  %vm2116_vm9 = vcmp.eq.s32.totalorder %v2099_v32, %v4316_v25  ;;  %vm2117_vm10 = vcmp.eq.s32.totalorder %v2100_v42, %v4316_v25 }
 0x2bc   :  { %3537 = vmatpush3.bf16.msra.mxu0 %v2263_v31  ;;  %vm2119_vm11 = vcmp.eq.s32.totalorder %v2102_v28, %v4316_v25  ;;  %vm2121_vm12 = vcmp.eq.s32.totalorder %v2104_v58, %v4316_v25  ;;  %vm2123_vm13 = vcmp.eq.s32.totalorder %v2106_v47, %v4316_v25  ;;  %vm2114_vm14 = vcmp.eq.s32.totalorder %v2097_v54, %v4316_v25 }
 0x2bd   :  { %vm2118_vm15 = vcmp.eq.s32.totalorder %v2101_v46, %v4316_v25  ;;  %v2103_v31 = vshra.s32 %v2085_v30, 3 }
 0x2bf   :  { %3515 = vmatmul.mubr.msk.bf16.gmra.mxu1 %vm1927_vm2, %v4055_v39  ;;  %v2094_v39 = vshra.s32 %v2076_v37, 3  ;;  %v2087_v37 = vadd.s32 104, %v3884_v50 }
 0x2c0   :  { %3518 = vmatprep.mubr.msk.bf16.mxu1 %vm1927_vm2, %v4034_v61  ;;  %v2075_v61 = vadd.s32 8, %v3884_v50 }
 0x2c1   :  { %vm2111_vm3 = vcmp.eq.s32.totalorder %v2094_v39, %v4316_v25 }
 0x2c7   :  { %3519 = vmatmul.mubr.msk.bf16.gmra.mxu1 %vm1927_vm2, %v4076_v2  ;;  %v2092_v2 = vshra.s32 %v3884_v50, 3 }
 0x2c8   :  { %3522 = vmatprep.mubr.msk.bf16.mxu1 %vm1927_vm2, %v4096_v1  ;;  %v2077_v1 = vadd.s32 24, %v3884_v50 }
 0x2c9   :  { %vm2109_vm4 = vcmp.eq.s32.totalorder %v2092_v2, %v4316_v25  ;;  %v2089_v2 = vadd.s32 120, %v3884_v50 }
 0x2ca   :  { %v2095_v44 = vshra.s32 %v2077_v1, 3 }
 0x2cc   :  { %vm2112_vm6 = vcmp.eq.s32.totalorder %v2095_v44, %v4316_v25 }
 0x2cf   :  { %3523 = vmatmul.mubr.msk.bf16.gmra.mxu1 %vm1927_vm2, %v4101_v38  ;;  %v2093_v38 = vshra.s32 %v2075_v61, 3  ;;  %v2105_v61 = vshra.s32 %v2087_v37, 3 }
 0x2d0   :  { %3590 = vmatprep.mubr.msk.bf16.mxu1 %vm3774_vm1, %v3773_v9 }
 0x2d1   :  { %vm2110_vm5 = vcmp.eq.s32.totalorder %v2093_v38, %v4316_v25  ;;  %v2107_v38 = vshra.s32 %v2089_v2, 3 }
 0x377   :  { %v3512_v55 = vpop.f32.mrf.mxu1 }
 0x378   :  { %v4322_v59 = vsel %vm2111_vm3, %v3512_v55, -1e+30  ;;  %vm2120_vm3 = vcmp.eq.s32.totalorder %v2103_v31, %v4316_v25 }
 0x379   :  { %2145 = vmax.xlane.f32.xlu0 %v4322_v59  ;;  %v2010_v60 = vpop.f32.mrf.mxu1 }
 0x37a   :  { %v4328_v12 = vsel %vm2109_vm4, %v2010_v60, -1e+30  ;;  %vm2122_vm4 = vcmp.eq.s32.totalorder %v2105_v61, %v4316_v25 }
 0x37b   :  { %v3513_v22 = vpop.f32.mrf.mxu1 }
 0x37c   :  { %v4336_v6 = vsel %vm2112_vm6, %v3513_v22, -1e+30  ;;  %vm3000_vm6 = vcmask 64512  }
 0x37d   :  { %2141 = vmax.xlane.f32.xlu0 %v4328_v12  ;;  %v2013_v3 = vpop.f32.mrf.mxu1 }
 0x37e   :  { %v4333_v26 = vsel %vm2110_vm5, %v2013_v3, -1e+30  ;;  %vm2124_vm5 = vcmp.eq.s32.totalorder %v2107_v38, %v4316_v25 }
 0x37f   :  { %2143 = vmax.xlane.f32.xlu1 %v4333_v26  ;;  %v3516_v41 = vpop.f32.mrf.mxu1 }
 0x380   :  { %v4346_v17 = vsel %vm2115_vm8, %v3516_v41, -1e+30  ;;  %vm3006_vm8 = vcmask 130048  }
 0x381   :  { %2147 = vmax.xlane.f32.xlu0 %v4336_v6  ;;  %v2026_v62 = vpop.f32.mrf.mxu1 }
 0x382   :  { %v4341_v11 = vsel %vm2113_vm7, %v2026_v62, -1e+30  ;;  %vm3003_vm7 = vcmask 97280  }
 0x383   :  { %v3517_v10 = vpop.f32.mrf.mxu1 }
 0x384   :  { %v4351_v45 = vsel %vm2116_vm9, %v3517_v10, -1e+30  ;;  %vm3009_vm9 = vcmask 162816  }
 0x385   :  { %2149 = vmax.xlane.f32.xlu0 %v4341_v11  ;;  %v2029_v23 = vpop.f32.mrf.mxu1 }
 0x386   :  { %v4378_v4 = vsel %vm2114_vm14, %v2029_v23, -1e+30 }
 0x387   :  { %v3520_v57 = vpop.f32.mrf.mxu1 }
 0x388   :  { %v4363_v43 = vsel %vm2119_vm11, %v3520_v57, -1e+30 }
 0x389   :  { %2153 = vmax.xlane.f32.xlu0 %v4346_v17  ;;  %v2042_v19 = vpop.f32.mrf.mxu1 }
 0x38a   :  { %v4358_v52 = vsel %vm2117_vm10, %v2042_v19, -1e+30  ;;  %vm3012_vm10 = vcmask 195584  }
 0x38b   :  { %v3521_v40 = vpop.f32.mrf.mxu1 }
 0x38c   :  { %v4388_v1 = vsel %vm2120_vm3, %v3521_v40, -1e+30 }
 0x38d   :  { %2155 = vmax.xlane.f32.xlu0 %v4351_v45  ;;  %v2045_v24 = vpop.f32.mrf.mxu1 }
 0x38e   :  { %v4383_v20 = vsel %vm2118_vm15, %v2045_v24, -1e+30 }
 0x38f   :  { %v3524_v35 = vpop.f32.mrf.mxu1 }
 0x390   :  { %1331 = vrot.lane.b32.xlu1 %v4014_v27, %s3785_s16  ;;  %v4371_v27 = vsel %vm2123_vm13, %v3524_v35, -1e+30 }
 0x391   :  { %2157 = vmax.xlane.f32.xlu0 %v4358_v52  ;;  %v2058_v5 = vpop.f32.mrf.mxu1 }
 0x392   :  { %v4367_v49 = vsel %vm2121_vm12, %v2058_v5, -1e+30 }
 0x393   :  { %v3525_v39 = vpop.f32.mrf.mxu1 }
 0x394   :  { %v4396_v44 = vsel %vm2124_vm5, %v3525_v39, -1e+30 }
 0x395   :  { %2161 = vmax.xlane.f32.xlu0 %v4363_v43  ;;  %v2061_v55 = vpop.f32.mrf.mxu1 }
 0x396   :  { %v4392_v60 = vsel %vm2122_vm4, %v2061_v55, -1e+30 }
 0x399   :  { %2165 = vmax.xlane.f32.xlu0 %v4367_v49 }
 0x39d   :  { %2169 = vmax.xlane.f32.xlu0 %v4371_v27 }
 0x3b4   :  { %2151 = vmax.xlane.f32.xlu1 %v4378_v4 }
 0x3b8   :  { %2159 = vmax.xlane.f32.xlu1 %v4383_v20 }
 0x3bc   :  { %2163 = vmax.xlane.f32.xlu1 %v4388_v1 }
 0x3c0   :  { %2167 = vmax.xlane.f32.xlu1 %v4392_v60 }
 0x3c4   :  { %2171 = vmax.xlane.f32.xlu1 %v4396_v44 }
 0x402   :  { %v2146_v0 = vpop.xlane.xlu0 %2145 }
 0x403   :  { %v2175_v50 = vsub.f32 %v4322_v59, %v2146_v0 }
 0x405   :  { %v2193_v22 = vmul.f32 1.442695, %v2175_v50 }
 0x406   :  { %v2142_v3 = vpop.xlane.xlu0 %2141 }
 0x407   :  { %3677 = vpow2.f32 %v2193_v22  ;;  %v2173_v15 = vsub.f32 %v4328_v12, %v2142_v3  ;;  %v1375_v12 = vrot.slane %v1367_v48, %v3897_v56 }
 0x408   :  { %v2144_v16 = vpop.xlane.xlu1 %2143 }
 0x409   :  { %v2189_v41 = vmul.f32 1.442695, %v2173_v15  ;;  %v2174_v62 = vsub.f32 %v4333_v26, %v2144_v16  ;;  %v1382_v26 = vrot.slane %v1368_v21, %v3897_v56 }
 0x40a   :  { %v2148_v7 = vpop.xlane.xlu0 %2147 }
 0x40b   :  { %3679 = vpow2.f32 %v2189_v41  ;;  %v2191_v8 = vmul.f32 1.442695, %v2174_v62  ;;  %v2176_v25 = vsub.f32 %v4336_v6, %v2148_v7 }
 0x40c   :  { %v1332_v10 = vpop.permute.xlu1 %1331 }
 0x40d   :  { %3681 = vpow2.f32 %v2191_v8  ;;  %v2195_v23 = vmul.f32 1.442695, %v2176_v25  ;;  %v1383_v32 = vcombine.low %v4179_v34, %v1332_v10  ;;  %v1384_v59 = vcombine.high %v4179_v34, %v1332_v10 }
 0x40e   :  { %v2150_v29 = vpop.xlane.xlu0 %2149 }
 0x40f   :  { %3683 = vpow2.f32 %v2195_v23  ;;  %v1391_v6 = vrot.slane %v1383_v32, %v3897_v56  ;;  %v1398_v57 = vrot.slane %v1384_v59, %v3897_v56  ;;  %v2177_v40 = vsub.f32 %v4341_v11, %v2150_v29 }
 0x411   :  { %v1431_v19 = vcombine.low %v1375_v12, %v1391_v6  ;;  %v1432_v42 = vcombine.high %v1375_v12, %v1391_v6  ;;  %v1447_v14 = vcombine.low %v1382_v26, %v1398_v57  ;;  %v1448_v34 = vcombine.high %v1382_v26, %v1398_v57 }
 0x412   :  { %v2154_v24 = vpop.xlane.xlu0 %2153  ;;  %v2197_v11 = vmul.f32 1.442695, %v2177_v40 }
 0x413   :  { %v1439_v48 = vrot.slane %v1431_v19, %v3914_v63  ;;  %v1446_v28 = vrot.slane %v1432_v42, %v3914_v63  ;;  %v1455_v33 = vrot.slane %v1447_v14, %v3914_v63  ;;  %v1462_v18 = vrot.slane %v1448_v34, %v3914_v63 }
 0x414   :  { %v4420_v51 = vpop.eup %3677  ;;  %v2179_v21 = vsub.f32 %v4346_v17, %v2154_v24 }
 0x415   :  { %v3377_v35 = vcombine.low %v1439_v48, %v1446_v28  ;;  %v3379_v58 = vcombine.high %v1439_v48, %v1446_v28  ;;  %v3381_v36 = vcombine.low %v1455_v33, %v1462_v18  ;;  %v3383_v5 = vcombine.high %v1455_v33, %v1462_v18  ;;  %2225 = vadd.xlane.f32.xlu0 %v4420_v51 }
 0x416   :  { %v2201_v47 = vmul.f32 1.442695, %v2179_v21  ;;  %v2156_v53 = vpop.xlane.xlu0 %2155 }
 0x417   :  { %v1647_v54 = vrot.slane %v3377_v35, %v3897_v56  ;;  %v1663_v13 = vrot.slane %v3379_v58, %v3897_v56  ;;  %v1679_v46 = vrot.slane %v3381_v36, %v3897_v56  ;;  %v1695_v30 = vrot.slane %v3383_v5, %v3897_v56 }
 0x418   :  { %v3680_v31 = vpop.eup %3679  ;;  %3685 = vpow2.f32 %v2201_v47  ;;  %v2180_v17 = vsub.f32 %v4351_v45, %v2156_v53 }
 0x419   :  { %2221 = vadd.xlane.f32.xlu0 %v3680_v31  ;;  %v1704_v37 = vcombine.high %v1647_v54, %v1663_v13  ;;  %v1736_v39 = vcombine.high %v1679_v46, %v1695_v30  ;;  %v1703_v61 = vcombine.low %v1647_v54, %v1663_v13  ;;  %v1735_v2 = vcombine.low %v1679_v46, %v1695_v30 }
 0x41a   :  { %v3682_v55 = vpop.eup %3681  ;;  %v2203_v38 = vmul.f32 1.442695, %v2180_v17  ;;  %v2158_v0 = vpop.xlane.xlu0 %2157  ;;  %3687 = vpow2.f32 %v2197_v11 }
 0x41b   :  { %v2253_v50 = vpack.c.bf16 %v3682_v55, %v3680_v31  ;;  %v1718_v22 = vrot.slane %v1704_v37, %v3914_v63  ;;  %v1750_v3 = vrot.slane %v1736_v39, %v3914_v63  ;;  %v1711_v16 = vrot.slane %v1703_v61, %v3914_v63 }
 0x41c   :  { %v3684_v15 = vpop.eup %3683  ;;  %3689 = vpow2.f32 %v2203_v38  ;;  %v1743_v45 = vrot.slane %v1735_v2, %v3914_v63  ;;  %v2181_v10 = vsub.f32 %v4358_v52, %v2158_v0  ;;  %v3661_v2 = vld [vmem:[%s4676_s3 + $0x8] sm:$0xff]  }
 0x41d   :  { %3542 = vmatprep.mubr.bf16.mxu0 %v2253_v50  ;;  %2227 = vadd.xlane.f32.xlu1 %v3684_v15  ;;  %v1769_v41 = vcombine.low %v1718_v22, %v1750_v3  ;;  %v1770_v62 = vcombine.high %v1718_v22, %v1750_v3  ;;  %v2254_v42 = vpack.c.bf16 %v3684_v15, %v4420_v51 }
 0x41e   :  { %v2162_v7 = vpop.xlane.xlu0 %2161  ;;  %v1767_v8 = vcombine.low %v1711_v16, %v1743_v45  ;;  %v1768_v25 = vcombine.high %v1711_v16, %v1743_v45  ;;  %v2205_v26 = vmul.f32 1.442695, %v2181_v10 }
 0x41f   :  { %v2183_v23 = vsub.f32 %v4363_v43, %v2162_v7  ;;  %v2262_v32 = vpack.c.bf16 %v1770_v62, %v1769_v41 }
 0x420   :  { %v2261_v59 = vpack.c.bf16 %v1768_v25, %v1767_v8 }
 0x421   :  { %v2209_v12 = vmul.f32 1.442695, %v2183_v23  ;;  %3538 = vmatprep.subr.bf16.mxu0 %v2262_v32  ;;  %2223 = vadd.xlane.f32.xlu1 %v3682_v55 }
 0x422   :  { %3539 = vmatpush3.bf16.msra.mxu0 %v2262_v32  ;;  %v2166_v29 = vpop.xlane.xlu0 %2165 }
 0x423   :  { %3691 = vpow2.f32 %v2209_v12  ;;  %v2185_v6 = vsub.f32 %v4367_v49, %v2166_v29  ;;  %3540 = vmatprep.subr.bf16.mxu0 %v2261_v59 }
 0x424   :  { %3693 = vpow2.f32 %v2205_v26 }
 0x425   :  { %v3686_v57 = vpop.eup %3685  ;;  %v2213_v52 = vmul.f32 1.442695, %v2185_v6 }
 0x426   :  { %2233 = vadd.xlane.f32.xlu0 %v3686_v57  ;;  %3541 = vmatpush3.bf16.msra.mxu0 %v2261_v59  ;;  %v2170_v19 = vpop.xlane.xlu0 %2169 }
 0x427   :  { %v2187_v43 = vsub.f32 %v4371_v27, %v2170_v19  ;;  %3558 = vmatprep.subr.bf16.mxu0 %v3773_v9  ;;  %v3688_v14 = vpop.eup %3687  ;;  %3695 = vpow2.f32 %v2213_v52 }
 0x429   :  { %v3690_v34 = vpop.eup %3689  ;;  %3543 = vmatmul.mubr.bf16.vlgmr.msra.gmra.mxu0 %v2254_v42  ;;  %v2217_v49 = vmul.f32 1.442695, %v2187_v43 }
 0x42a   :  { %2229 = vadd.xlane.f32.xlu0 %v3688_v14  ;;  %2235 = vadd.xlane.f32.xlu1 %v3690_v34 }
 0x42b   :  { %3697 = vpow2.f32 %v2217_v49  ;;  %3559 = vmatpush3.bf16.msra.mxu0 %v3661_v2 }
 0x42c   :  { %3560 = vmatprep.subr.bf16.mxu0 %v3773_v9 }
 0x430   :  { %v3692_v40 = vpop.eup %3691 }
 0x431   :  { %2241 = vadd.xlane.f32.xlu0 %v3692_v40  ;;  %v3694_v24 = vpop.eup %3693 }
 0x434   :  { %v3696_v48 = vpop.eup %3695 }
 0x435   :  { %2237 = vadd.xlane.f32.xlu0 %v3694_v24 }
 0x438   :  { %v3698_v28 = vpop.eup %3697 }
 0x439   :  { %2245 = vadd.xlane.f32.xlu0 %v3696_v48 }
 0x43d   :  { %v2152_v27 = vpop.xlane.xlu1 %2151  ;;  %2249 = vadd.xlane.f32.xlu0 %v3698_v28 }
 0x43e   :  { %v2178_v33 = vsub.f32 %v4378_v4, %v2152_v27 }
 0x440   :  { %v2199_v18 = vmul.f32 1.442695, %v2178_v33 }
 0x441   :  { %v2160_v51 = vpop.xlane.xlu1 %2159 }
 0x442   :  { %3699 = vpow2.f32 %v2199_v18  ;;  %v2182_v21 = vsub.f32 %v4383_v20, %v2160_v51  ;;  %v2256_v20 = vpack.c.bf16 %v3690_v34, %v3686_v57 }
 0x444   :  { %v2207_v35 = vmul.f32 1.442695, %v2182_v21 }
 0x445   :  { %v2164_v58 = vpop.xlane.xlu1 %2163 }
 0x446   :  { %3701 = vpow2.f32 %v2207_v35  ;;  %v2184_v36 = vsub.f32 %v4388_v1, %v2164_v58 }
 0x448   :  { %v2211_v5 = vmul.f32 1.442695, %v2184_v36 }
 0x449   :  { %v2168_v11 = vpop.xlane.xlu1 %2167 }
 0x44a   :  { %3703 = vpow2.f32 %v2211_v5  ;;  %v2186_v47 = vsub.f32 %v4392_v60, %v2168_v11 }
 0x44c   :  { %v2215_v53 = vmul.f32 1.442695, %v2186_v47 }
 0x44d   :  { %v2172_v54 = vpop.xlane.xlu1 %2171 }
 0x44e   :  { %3705 = vpow2.f32 %v2215_v53  ;;  %v2188_v4 = vsub.f32 %v4396_v44, %v2172_v54 }
 0x44f   :  { %v3700_v13 = vpop.eup %3699 }
 0x450   :  { %v2219_v46 = vmul.f32 1.442695, %v2188_v4  ;;  %2231 = vadd.xlane.f32.xlu1 %v3700_v13  ;;  %v2255_v30 = vpack.c.bf16 %v3700_v13, %v3688_v14 }
 0x452   :  { %3707 = vpow2.f32 %v2219_v46  ;;  %3546 = vmatprep.mubr.bf16.mxu0 %v2255_v30 }
 0x453   :  { %v3702_v31 = vpop.eup %3701  ;;  %3547 = vmatmul.mubr.bf16.gmra.mxu0 %v2256_v20 }
 0x454   :  { %v2257_v1 = vpack.c.bf16 %v3702_v31, %v3694_v24 }
 0x456   :  { %3550 = vmatprep.mubr.bf16.mxu0 %v2257_v1 }
 0x457   :  { %v3704_v17 = vpop.eup %3703 }
 0x458   :  { %2243 = vadd.xlane.f32.xlu1 %v3704_v17  ;;  %v2258_v37 = vpack.c.bf16 %v3704_v17, %v3692_v40 }
 0x45b   :  { %v3706_v60 = vpop.eup %3705  ;;  %3551 = vmatmul.mubr.bf16.gmra.mxu0 %v2258_v37 }
 0x45c   :  { %2239 = vadd.xlane.f32.xlu1 %v3702_v31  ;;  %v2259_v39 = vpack.c.bf16 %v3706_v60, %v3696_v48 }
 0x45e   :  { %3554 = vmatprep.mubr.bf16.mxu0 %v2259_v39 }
 0x45f   :  { %v3708_v44 = vpop.eup %3707 }
 0x460   :  { %2247 = vadd.xlane.f32.xlu1 %v3706_v60  ;;  %v2260_v61 = vpack.c.bf16 %v3708_v44, %v3698_v28 }
 0x463   :  { %3555 = vmatmul.mubr.bf16.gmra.mxu0 %v2260_v61 }
 0x464   :  { %2251 = vadd.xlane.f32.xlu1 %v3708_v44  ;;  %3562 = vmatprep.mubr.msk.bf16.mxu0 %vm3774_vm1, %v3773_v9 }
 0x49e   :  { %v2226_v55 = vpop.xlane.xlu0 %2225 }
 0x4a2   :  { %v2222_v0 = vpop.xlane.xlu0 %2221 }
 0x4a3   :  { %3709 = vrcp.f32 %v2222_v0 }
 0x4a4   :  { %3711 = vrcp.f32 %v2226_v55 }
 0x4a6   :  { %v2228_v38 = vpop.xlane.xlu1 %2227 }
 0x4a7   :  { %3713 = vrcp.f32 %v2228_v38 }
 0x4aa   :  { %v2224_v50 = vpop.xlane.xlu1 %2223 }
 0x4ab   :  { %3715 = vrcp.f32 %v2224_v50 }
 0x4af   :  { %v2234_v48 = vpop.xlane.xlu0 %2233 }
 0x4b0   :  { %v3710_v3 = vpop.eup %3709 }
 0x4b1   :  { %v3712_v45 = vpop.eup %3711 }
 0x4b3   :  { %v2236_v11 = vpop.xlane.xlu1 %2235  ;;  %v2230_v47 = vpop.xlane.xlu0 %2229 }
 0x4b4   :  { %v3714_v62 = vpop.eup %3713  ;;  %3717 = vrcp.f32 %v2230_v47 }
 0x4b5   :  { %3719 = vrcp.f32 %v2234_v48 }
 0x4b6   :  { %3721 = vrcp.f32 %v2236_v11 }
 0x4b8   :  { %v3716_v8 = vpop.eup %3715 }
 0x4ba   :  { %v2242_v13 = vpop.xlane.xlu0 %2241 }
 0x4be   :  { %v2238_v20 = vpop.xlane.xlu0 %2237 }
 0x4c1   :  { %v3718_v60 = vpop.eup %3717 }
 0x4c2   :  { %v2246_v1 = vpop.xlane.xlu0 %2245  ;;  %v3720_v2 = vpop.eup %3719 }
 0x4c3   :  { %v3722_v38 = vpop.eup %3721 }
 0x4c6   :  { %v2250_v39 = vpop.xlane.xlu0 %2249 }
 0x4d9   :  { %v2232_v46 = vpop.xlane.xlu1 %2231 }
 0x4da   :  { %3723 = vrcp.f32 %v2232_v46 }
 0x4db   :  { %3725 = vrcp.f32 %v2238_v20 }
 0x4dc   :  { %3727 = vrcp.f32 %v2242_v13 }
 0x4e1   :  { %v2244_v30 = vpop.xlane.xlu1 %2243 }
 0x4e2   :  { %3729 = vrcp.f32 %v2244_v30 }
 0x4e5   :  { %v2240_v31 = vpop.xlane.xlu1 %2239 }
 0x4e6   :  { %3731 = vrcp.f32 %v2240_v31 }
 0x4e7   :  { %3733 = vrcp.f32 %v2246_v1  ;;  %v3724_v50 = vpop.eup %3723 }
 0x4e8   :  { %3735 = vrcp.f32 %v2250_v39 }
 0x4e9   :  { %v3544_v22 = vpop.f32.mrf.mxu0  ;;  %v2248_v17 = vpop.xlane.xlu1 %2247 }
 0x4ea   :  { %v2384_v7 = vmul.f32 %v3712_v45, %v3544_v22  ;;  %3737 = vrcp.f32 %v2248_v17 }
 0x4eb   :  { %v2303_v15 = vpop.f32.mrf.mxu0 }
 0x4ec   :  { %v2382_v16 = vmul.f32 %v3710_v3, %v2303_v15 }
 0x4ed   :  { %v3545_v41 = vpop.f32.mrf.mxu0  ;;  %v2252_v22 = vpop.xlane.xlu1 %2251 }
 0x4ee   :  { %v2398_v10 = vcombine.low %v2382_v16, %v2384_v7  ;;  %v2399_v23 = vcombine.high %v2382_v16, %v2384_v7  ;;  %v2385_v32 = vmul.f32 %v3714_v62, %v3545_v41  ;;  %3739 = vrcp.f32 %v2252_v22 }
 0x4ef   :  { %v2306_v25 = vpop.f32.mrf.mxu0 }
 0x4f0   :  { %v2383_v59 = vmul.f32 %v3716_v8, %v2306_v25  ;;  %v2406_v26 = vrot.slane %v2398_v10, %v3897_v56  ;;  %v2413_v6 = vrot.slane %v2399_v23, %v3897_v56 }
 0x4f2   :  { %v2414_v12 = vcombine.low %v2383_v59, %v2385_v32  ;;  %v2415_v29 = vcombine.high %v2383_v59, %v2385_v32  ;;  %v3726_v32 = vpop.eup %3725 }
 0x4f4   :  { %v2422_v57 = vrot.slane %v2414_v12, %v3897_v56  ;;  %v2429_v19 = vrot.slane %v2415_v29, %v3897_v56 }
 0x4f6   :  { %v2462_v52 = vcombine.low %v2406_v26, %v2422_v57  ;;  %v2463_v43 = vcombine.high %v2406_v26, %v2422_v57  ;;  %v2478_v42 = vcombine.low %v2413_v6, %v2429_v19  ;;  %v2479_v14 = vcombine.high %v2413_v6, %v2429_v19  ;;  %v3728_v19 = vpop.eup %3727 }
 0x4f8   :  { %v2470_v34 = vrot.slane %v2462_v52, %v3914_v63  ;;  %v2477_v49 = vrot.slane %v2463_v43, %v3914_v63  ;;  %v2486_v40 = vrot.slane %v2478_v42, %v3914_v63  ;;  %v2493_v24 = vrot.slane %v2479_v14, %v3914_v63 }
 0x4fa   :  { %v3401_v28 = vcombine.low %v2470_v34, %v2477_v49  ;;  %v3403_v27 = vcombine.high %v2470_v34, %v2477_v49  ;;  %v3405_v33 = vcombine.low %v2486_v40, %v2493_v24  ;;  %v3407_v18 = vcombine.high %v2486_v40, %v2493_v24  ;;  %v3730_v34 = vpop.eup %3729 }
 0x4fc   :  { %v4459_v51 = vrot.slane %v3401_v28, %v3897_v56  ;;  %v4462_v21 = vrot.slane %v3403_v27, %v3897_v56  ;;  %v4465_v35 = vrot.slane %v3405_v33, %v3897_v56  ;;  %v4468_v58 = vrot.slane %v3407_v18, %v3897_v56  ;;  %v3732_v28 = vpop.eup %3731 }
 0x4fd   :  { %v3734_v11 = vpop.eup %3733 }
 0x4fe   :  { %v2734_v36 = vcombine.low %v4459_v51, %v4462_v21  ;;  %v2766_v5 = vcombine.low %v4465_v35, %v4468_v58  ;;  %v2735_v10 = vcombine.high %v4459_v51, %v4462_v21  ;;  %v2767_v23 = vcombine.high %v4465_v35, %v4468_v58  ;;  %v3736_v30 = vpop.eup %3735 }
 0x500   :  { %v4475_v53 = vrot.slane %v2734_v36, %v3914_v63  ;;  %v4478_v54 = vrot.slane %v2766_v5, %v3914_v63  ;;  %v4491_v24 = vrot.slane %v2735_v10, %v3914_v63  ;;  %v4494_v48 = vrot.slane %v2767_v23, %v3914_v63 }
 0x502   :  { %v2798_v4 = vcombine.low %v4475_v53, %v4478_v54  ;;  %v2800_v17 = vcombine.low %v4491_v24, %v4494_v48 }
 0x513   :  { %v3548_v37 = vpop.f32.mrf.mxu0 }
 0x514   :  { %v2388_v0 = vmul.f32 %v3720_v2, %v3548_v37 }
 0x515   :  { %v2319_v44 = vpop.f32.mrf.mxu0 }
 0x516   :  { %v2386_v61 = vmul.f32 %v3718_v60, %v2319_v44  ;;  %v2799_v44 = vcombine.high %v4475_v53, %v4478_v54 }
 0x517   :  { %v3549_v55 = vpop.f32.mrf.mxu0 }
 0x518   :  { %v2430_v15 = vcombine.low %v2386_v61, %v2388_v0  ;;  %v2431_v16 = vcombine.high %v2386_v61, %v2388_v0  ;;  %v2389_v45 = vmul.f32 %v3722_v38, %v3549_v55 }
 0x519   :  { %v2322_v3 = vpop.f32.mrf.mxu0 }
 0x51a   :  { %v2387_v41 = vmul.f32 %v3724_v50, %v2322_v3  ;;  %v2438_v59 = vrot.slane %v2430_v15, %v3897_v56  ;;  %v2445_v12 = vrot.slane %v2431_v16, %v3897_v56  ;;  %v3738_v50 = vpop.eup %3737 }
 0x51b   :  { %v3552_v62 = vpop.f32.mrf.mxu0 }
 0x51c   :  { %v2446_v7 = vcombine.low %v2387_v41, %v2389_v45  ;;  %v2447_v8 = vcombine.high %v2387_v41, %v2389_v45  ;;  %v2392_v49 = vmul.f32 %v3728_v19, %v3552_v62  ;;  %v3740_v45 = vpop.eup %3739 }
 0x51d   :  { %v2335_v25 = vpop.f32.mrf.mxu0 }
 0x51e   :  { %v2454_v29 = vrot.slane %v2446_v7, %v3897_v56  ;;  %v2461_v26 = vrot.slane %v2447_v8, %v3897_v56  ;;  %v2390_v6 = vmul.f32 %v3726_v32, %v2335_v25 }
 0x51f   :  { %v3553_v57 = vpop.f32.mrf.mxu0 }
 0x520   :  { %v2494_v52 = vcombine.low %v2438_v59, %v2454_v29  ;;  %v2495_v43 = vcombine.high %v2438_v59, %v2454_v29  ;;  %v2510_v42 = vcombine.low %v2445_v12, %v2461_v26  ;;  %v2511_v14 = vcombine.high %v2445_v12, %v2461_v26 }
 0x521   :  { %v2338_v40 = vpop.f32.mrf.mxu0  ;;  %v2534_v21 = vcombine.low %v2390_v6, %v2392_v49  ;;  %v2535_v35 = vcombine.high %v2390_v6, %v2392_v49  ;;  %v2393_v58 = vmul.f32 %v3730_v34, %v3553_v57 }
 0x522   :  { %v2502_v27 = vrot.slane %v2494_v52, %v3914_v63  ;;  %v2509_v33 = vrot.slane %v2495_v43, %v3914_v63  ;;  %v2518_v18 = vrot.slane %v2510_v42, %v3914_v63  ;;  %v2525_v51 = vrot.slane %v2511_v14, %v3914_v63 }
 0x523   :  { %v2391_v36 = vmul.f32 %v3732_v28, %v2338_v40  ;;  %v3556_v5 = vpop.f32.mrf.mxu0  ;;  %v2542_v61 = vrot.slane %v2534_v21, %v3897_v56  ;;  %v2549_v2 = vrot.slane %v2535_v35, %v3897_v56 }
 0x524   :  { %v3402_v47 = vcombine.low %v2502_v27, %v2509_v33  ;;  %v3404_v13 = vcombine.high %v2502_v27, %v2509_v33  ;;  %v3406_v46 = vcombine.low %v2518_v18, %v2525_v51  ;;  %v3408_v37 = vcombine.high %v2518_v18, %v2525_v51  ;;  %v3662_v18 = vld [vmem:[%s4676_s3] sm:$0xff]   ;;  %s3786_s3 = smov 8  }
 0x525   :  { %v2550_v20 = vcombine.low %v2391_v36, %v2393_v58  ;;  %v2551_v31 = vcombine.high %v2391_v36, %v2393_v58  ;;  %v2351_v1 = vpop.f32.mrf.mxu0  ;;  %v2396_v60 = vmul.f32 %v3736_v30, %v3556_v5  ;;  %3561 = vmatpush3.bf16.msra.mxu0 %v3662_v18 }
 0x526   :  { %v2394_v39 = vmul.f32 %v3734_v11, %v2351_v1  ;;  %v4509_v3 = vrot.slane %v3402_v47, %v3897_v56  ;;  %v4512_v15 = vrot.slane %v3404_v13, %v3897_v56  ;;  %v4515_v16 = vrot.slane %v3406_v46, %v3897_v56  ;;  %3566 = vmatprep.subr.bf16.mxu0 %v3773_v9 }
 0x527   :  { %v2558_v55 = vrot.slane %v2550_v20, %v3897_v56  ;;  %v2565_v38 = vrot.slane %v2551_v31, %v3897_v56  ;;  %v3557_v0 = vpop.f32.mrf.mxu0  ;;  %v4518_v59 = vrot.slane %v3408_v37, %v3897_v56 }
 0x528   :  { %v2566_v22 = vcombine.low %v2394_v39, %v2396_v60  ;;  %v2567_v10 = vcombine.high %v2394_v39, %v2396_v60  ;;  %v2397_v23 = vmul.f32 %v3740_v45, %v3557_v0  ;;  %v2750_v43 = vcombine.low %v4509_v3, %v4512_v15 }
 0x529   :  { %v2598_v41 = vcombine.low %v2542_v61, %v2558_v55  ;;  %v2599_v62 = vcombine.high %v2542_v61, %v2558_v55  ;;  %v2614_v7 = vcombine.low %v2549_v2, %v2565_v38  ;;  %v2615_v8 = vcombine.high %v2549_v2, %v2565_v38  ;;  %v2354_v25 = vpop.f32.mrf.mxu0 }
 0x52a   :  { %v2395_v32 = vmul.f32 %v3738_v50, %v2354_v25  ;;  %v2574_v57 = vrot.slane %v2566_v22, %v3897_v56  ;;  %v2581_v40 = vrot.slane %v2567_v10, %v3897_v56  ;;  %v2782_v33 = vcombine.low %v4515_v16, %v4518_v59 }
 0x52b   :  { %v2606_v12 = vrot.slane %v2598_v41, %v3914_v63  ;;  %v2613_v29 = vrot.slane %v2599_v62, %v3914_v63  ;;  %v2622_v26 = vrot.slane %v2614_v7, %v3914_v63  ;;  %v2629_v6 = vrot.slane %v2615_v8, %v3914_v63 }
 0x52c   :  { %v2582_v19 = vcombine.low %v2395_v32, %v2397_v23  ;;  %v2583_v52 = vcombine.high %v2395_v32, %v2397_v23  ;;  %v2801_v7 = vcombine.high %v4491_v24, %v4494_v48  ;;  %v2758_v8 = vrot.slane %v2750_v43, %v3914_v63 }
 0x52d   :  { %v3409_v42 = vcombine.low %v2606_v12, %v2613_v29  ;;  %v3411_v14 = vcombine.high %v2606_v12, %v2613_v29  ;;  %v3413_v34 = vcombine.low %v2622_v26, %v2629_v6  ;;  %v3415_v49 = vcombine.high %v2622_v26, %v2629_v6 }
 0x52e   :  { %v2590_v28 = vrot.slane %v2582_v19, %v3897_v56  ;;  %v2597_v27 = vrot.slane %v2583_v52, %v3897_v56  ;;  %v2790_v6 = vrot.slane %v2782_v33, %v3914_v63  ;;  %v2751_v19 = vcombine.high %v4509_v3, %v4512_v15 }
 0x52f   :  { %v2814_v51 = vrot.slane %v3409_v42, %v3897_v56  ;;  %v2830_v21 = vrot.slane %v3411_v14, %v3897_v56  ;;  %v2846_v35 = vrot.slane %v3413_v34, %v3897_v56  ;;  %v2862_v58 = vrot.slane %v3415_v49, %v3897_v56 }
 0x530   :  { %v2630_v36 = vcombine.low %v2574_v57, %v2590_v28  ;;  %v2631_v5 = vcombine.high %v2574_v57, %v2590_v28  ;;  %v2646_v11 = vcombine.low %v2581_v40, %v2597_v27  ;;  %v2647_v47 = vcombine.high %v2581_v40, %v2597_v27 }
 0x531   :  { %v2871_v13 = vcombine.high %v2814_v51, %v2830_v21  ;;  %v2903_v46 = vcombine.high %v2846_v35, %v2862_v58  ;;  %v2870_v30 = vcombine.low %v2814_v51, %v2830_v21  ;;  %v2902_v20 = vcombine.low %v2846_v35, %v2862_v58 }
 0x532   :  { %v2638_v31 = vrot.slane %v2630_v36, %v3914_v63  ;;  %v2645_v1 = vrot.slane %v2631_v5, %v3914_v63  ;;  %v2654_v37 = vrot.slane %v2646_v11, %v3914_v63  ;;  %v2661_v60 = vrot.slane %v2647_v47, %v3914_v63 }
 0x533   :  { %v2885_v39 = vrot.slane %v2871_v13, %v3914_v63  ;;  %v2917_v61 = vrot.slane %v2903_v46, %v3914_v63  ;;  %v4547_v2 = vrot.slane %v2870_v30, %v3914_v63  ;;  %v4550_v55 = vrot.slane %v2902_v20, %v3914_v63 }
 0x534   :  { %v3410_v38 = vcombine.low %v2638_v31, %v2645_v1  ;;  %v3412_v0 = vcombine.high %v2638_v31, %v2645_v1  ;;  %v3414_v50 = vcombine.low %v2654_v37, %v2661_v60  ;;  %v3416_v22 = vcombine.high %v2654_v37, %v2661_v60 }
 0x535   :  { %v2936_v45 = vcombine.low %v2885_v39, %v2917_v61  ;;  %v2935_v41 = vcombine.high %v4547_v2, %v4550_v55  ;;  %v2934_v62 = vcombine.low %v4547_v2, %v4550_v55  ;;  %v2937_v29 = vcombine.high %v2885_v39, %v2917_v61 }
 0x536   :  { %v2821_v25 = vrot.slane %v3410_v38, %v3897_v56  ;;  %v2837_v10 = vrot.slane %v3412_v0, %v3897_v56  ;;  %v2853_v23 = vrot.slane %v3414_v50, %v3897_v56  ;;  %v2869_v26 = vrot.slane %v3416_v22, %v3897_v56 }
 0x537   :  { %v3629_v32 = vpack.i.bf16 %v2936_v45, %v2800_v17  ;;  %v3624_v12 = vpack.i.bf16 %v2935_v41, %v2799_v44  ;;  %v2783_v48 = vcombine.high %v4515_v16, %v4518_v59  ;;  %v3634_v56 = vpack.i.bf16 %v2937_v29, %v2801_v7 }
 0x538   :  { %v2886_v57 = vcombine.low %v2821_v25, %v2837_v10  ;;  %v2887_v52 = vcombine.high %v2821_v25, %v2837_v10  ;;  %v2918_v24 = vcombine.low %v2853_v23, %v2869_v26  ;;  %v2919_v17 = vcombine.high %v2853_v23, %v2869_v26  ;;  %v3417_v26 = vld [vmem:[%s4674_s1 + $0x2] ss:$0 sm:$0xff] }
 0x539   :  { %3630 = vrot.lane.b32.xlu1 %v3629_v32, %s3786_s3  ;;  %3625 = vrot.lane.b32.xlu0 %v3624_v12, %s3787_s21  ;;  %v2803_v15 = vcombine.high %v2758_v8, %v2790_v6  ;;  %v2765_v14 = vrot.slane %v2751_v19, %v3914_v63  ;;  %v2802_v49 = vcombine.low %v2758_v8, %v2790_v6 }
 0x53a   :  { %v2894_v44 = vrot.slane %v2886_v57, %v3914_v63  ;;  %v2926_v43 = vrot.slane %v2918_v24, %v3914_v63  ;;  %v2901_v42 = vrot.slane %v2887_v52, %v3914_v63  ;;  %v2933_v3 = vrot.slane %v2919_v17, %v3914_v63  ;;  %v3749_v52 = vld [vmem:[%s4673_s0] sm:$0xff] }
 0x53b   :  { %v2797_v16 = vrot.slane %v2783_v48, %v3914_v63 }
 0x53c   :  { %v2939_v34 = vcombine.high %v2894_v44, %v2926_v43  ;;  %v2938_v40 = vcombine.low %v2894_v44, %v2926_v43  ;;  %v2941_v27 = vcombine.high %v2901_v42, %v2933_v3  ;;  %v2940_v33 = vcombine.low %v2901_v42, %v2933_v3  ;;  %v3750_v42 = vld [vmem:[%s4673_s0 + $0x8] sm:$0xff]  ;;  %s3751_s0 = scalar_lea.vmem %s3330_s9, 256 }
 0x53d   :  { %3635 = vrot.lane.b32.xlu1 %v3634_v56, %s3788_s22  ;;  %v2805_v18 = vcombine.high %v2765_v14, %v2797_v16  ;;  %v2804_v51 = vcombine.low %v2765_v14, %v2797_v16  ;;  %v3664_v16 = vld [vmem:[%s4677_s4] sm:$0xff]   ;;  %p3752_p0 = scmp.ne.s32.totalorder %s3330_s9, %s3751_s0  ;;  %p3757_p2 = scmp.lt.s32.totalorder %s3751_s0, %s3751_s0 }
 0x53e   :  { %v3644_v59 = vpack.i.bf16 %v2939_v34, %v2803_v15  ;;  %v3639_v28 = vpack.i.bf16 %v2938_v40, %v2802_v49  ;;  %v3663_v40 = vld [vmem:[%s4677_s4 + $0x8] sm:$0xff]  }
 0x53f   :  { %v3654_v21 = vpack.i.bf16 %v2941_v27, %v2805_v18  ;;  %v3649_v35 = vpack.i.bf16 %v2940_v33, %v2804_v51  ;;  %p3758_p3 = por %p3757_p2, %p3756_p1 }
 0x540   :  { %3645 = vrot.lane.b32.xlu0 %v3644_v59, %s3789_s23 }
 0x541   :  { %3640 = vrot.lane.b32.xlu1 %v3639_v28, %s3790_s24  ;;  %p3759_p4 = pnand %p3758_p3, %p3752_p0 }
 0x544   :  { %3655 = vrot.lane.b32.xlu0 %v3654_v21, %s3791_s25 }
 0x545   :  { %3650 = vrot.lane.b32.xlu1 %v3649_v35, %s3792_s26 }
 0x5ab   :  { %v3631_v58 = vpop.permute.xlu1 %3630  ;;  %v3626_v36 = vpop.permute.xlu0 %3625 }
 0x5ac   :  { %v3628_v5 = vunpack.i.h.bf16 %v3626_v36  ;;  %v3627_v63 = vunpack.i.l.bf16 %v3626_v36  ;;  %v3633_v47 = vunpack.i.h.bf16 %v3631_v58  ;;  %v3632_v13 = vunpack.i.l.bf16 %v3631_v58 }
 0x5ae   :  { %v2998_v46 = vsel %vm1927_vm2, %v2798_v4, %v3627_v63  ;;  %v2999_v30 = vsel %vm1927_vm2, %v2934_v62, %v3628_v5  ;;  %vm3015_vm2 = vcmask 228352  }
 0x5af   :  { %v3636_v11 = vpop.permute.xlu1 %3635  ;;  %v3001_v60 = vsel %vm3000_vm6, %v2998_v46, %v3632_v13  ;;  %v3002_v39 = vsel %vm3000_vm6, %v2999_v30, %v3633_v47 }
 0x5b0   :  { %v3638_v20 = vunpack.i.h.bf16 %v3636_v11  ;;  %v3637_v31 = vunpack.i.l.bf16 %v3636_v11 }
 0x5b2   :  { %v3646_v1 = vpop.permute.xlu0 %3645  ;;  %v3004_v55 = vsel %vm3003_vm7, %v3001_v60, %v3637_v31  ;;  %v3005_v38 = vsel %vm3003_vm7, %v3002_v39, %v3638_v20  ;;  %v3421_v20 = vld [vmem:[%s4674_s1 + $0x3] ss:$0 sm:$0xff]  ;;  %v3422_v39 = vld [vmem:[%s4674_s1 + $0x4] ss:$0 sm:$0xff] }
 0x5b3   :  { %v3641_v37 = vpop.permute.xlu1 %3640  ;;  %v3648_v0 = vunpack.i.h.bf16 %v3646_v1  ;;  %v3647_v50 = vunpack.i.l.bf16 %v3646_v1 }
 0x5b4   :  { %v3643_v61 = vunpack.i.h.bf16 %v3641_v37  ;;  %v3642_v2 = vunpack.i.l.bf16 %v3641_v37 }
 0x5b6   :  { %v3008_v22 = vsel %vm3006_vm8, %v3005_v38, %v3643_v61  ;;  %v3007_v53 = vsel %vm3006_vm8, %v3004_v55, %v3642_v2  ;;  %v3656_v54 = vpop.permute.xlu0 %3655 }
 0x5b7   :  { %v3651_v4 = vpop.permute.xlu1 %3650  ;;  %v3658_v45 = vunpack.i.h.bf16 %v3656_v54  ;;  %v3657_v41 = vunpack.i.l.bf16 %v3656_v54  ;;  %v3010_v8 = vsel %vm3009_vm9, %v3007_v53, %v3647_v50  ;;  %v3011_v25 = vsel %vm3009_vm9, %v3008_v22, %v3648_v0  ;;  %v3665_v0 = vld [vmem:[%s4678_s5 + $0x38] sm:$0xff]   ;;  %v3666_v50 = vld [vmem:[%s4678_s5 + $0x30] sm:$0xff]   ;;  %v3667_v22 = vld [vmem:[%s4678_s5 + $0x28] sm:$0xff]  }
 0x5b8   :  { %v3653_v62 = vunpack.i.h.bf16 %v3651_v4  ;;  %v3652_v7 = vunpack.i.l.bf16 %v3651_v4  ;;  %3575 = vmatpush3.bf16.msra.mxu1 %v3665_v0  ;;  %v3668_v53 = vld [vmem:[%s4678_s5 + $0x20] sm:$0xff]   ;;  %v3669_v54 = vld [vmem:[%s4678_s5 + $0x18] sm:$0xff]   ;;  %v3670_v4 = vld [vmem:[%s4678_s5 + $0x10] sm:$0xff]  }
 0x5b9   :  { %3576 = vmatprep.subr.bf16.mxu1 %v3773_v9 }
 0x5ba   :  { %v3013_v10 = vsel %vm3012_vm10, %v3010_v8, %v3652_v7  ;;  %v3014_v23 = vsel %vm3012_vm10, %v3011_v25, %v3653_v62  ;;  %v3423_v62 = vld [vmem:[%s4674_s1 + $0x6] ss:$0 sm:$0xff] }
 0x5bb   :  { %v3016_v32 = vsel %vm3015_vm2, %v3013_v10, %v3657_v41  ;;  %v3017_v12 = vsel %vm3015_vm2, %v3014_v23, %v3658_v45  ;;  %v3671_v45 = vld [vmem:[%s4678_s5 + $0x8] sm:$0xff]   ;;  %v3672_v41 = vld [vmem:[%s4678_s5] sm:$0xff]  }
 0x5bc   :  { %v3018_v29 = vpack.c.bf16 %v3017_v12, %v3016_v32  ;;  %3577 = vmatpush3.bf16.msra.mxu1 %v3666_v50 }
 0x5bd   :  { %3578 = vmatprep.subr.bf16.mxu1 %v3773_v9 }
 0x5be   :  { %3563 = vmatmul.mubr.msk.bf16.vlgmr.msra.gmra.mxu0 %vm34_vm0, %v3018_v29 }
 0x5bf   :  { %3570 = vmatprep.mubr.msk.bf16.mxu0 %vm3774_vm1, %v3773_v9  ;;  %3567 = vmatpush3.bf16.msra.mxu0 %v3663_v40 }
 0x5c0   :  { %3568 = vmatprep.subr.bf16.mxu0 %v3773_v9  ;;  %3579 = vmatpush3.bf16.msra.mxu1 %v3667_v22 }
 0x5c1   :  { %3580 = vmatprep.subr.bf16.mxu1 %v3773_v9 }
 0x5c3   :  { %3569 = vmatpush3.bf16.msra.mxu0 %v3664_v16  ;;  %v3427_v16 = vld [vmem:[%s4674_s1 + $0x5] ss:$0 sm:$0xff] }
 0x5c4   :  { %3581 = vmatpush3.bf16.msra.mxu1 %v3668_v53 }
 0x5c5   :  { %3582 = vmatprep.subr.bf16.mxu1 %v3773_v9 }
 0x5c8   :  { %3583 = vmatpush3.bf16.msra.mxu1 %v3669_v54 }
 0x5c9   :  { %3584 = vmatprep.subr.bf16.mxu1 %v3773_v9 }
 0x5cc   :  { %3585 = vmatpush3.bf16.msra.mxu1 %v3670_v4 }
 0x5cd   :  { %3586 = vmatprep.subr.bf16.mxu1 %v3773_v9 }
 0x5d0   :  { %3587 = vmatpush3.bf16.msra.mxu1 %v3671_v45 }
 0x5d1   :  { %3588 = vmatprep.subr.bf16.mxu1 %v3773_v9 }
 0x5d4   :  { %3589 = vmatpush3.bf16.msra.mxu1 %v3672_v41 }
 0x67e   :  { %v3076_v6 = vpop.f32.mrf.mxu0 }
 0x67f   :  { %v3077_v57 = vadd.f32 %v3417_v26, %v3076_v6 }
 0x680   :  { %v3564_v19 = vpop.f32.mrf.mxu0 }
 0x681   :  { %v4595_v24 = vadd.f32 %v3749_v52, %v3077_v57 }
 0x682   :  { %v3079_v48 = vpop.f32.mrf.mxu0 }
 0x683   :  { %v3080_v17 = vadd.f32 %v3417_v26, %v3079_v48  ;;  %v3085_v44 = vsel %vm34_vm0, %v4595_v24, 0.0  ;;  %v3093_v56 = vmul.f32 %v4595_v24, %v4595_v24 }
 0x684   :  { %3086 = vadd.xlane.f32.xlu1 %v3085_v44  ;;  %v3565_v43 = vpop.f32.mrf.mxu0 }
 0x685   :  { %v4604_v3 = vadd.f32 %v3750_v42, %v3080_v17  ;;  %v3095_v15 = vsel %vm34_vm0, %v3093_v56, 0.0 }
 0x686   :  { %3096 = vadd.xlane.f32.xlu0 %v3095_v15 }
 0x687   :  { %v3088_v14 = vsel %vm34_vm0, %v4604_v3, 0.0  ;;  %v3094_v34 = vmul.f32 %v4604_v3, %v4604_v3 }
 0x689   :  { %v3098_v49 = vsel %vm34_vm0, %v3094_v34, 0.0 }
 0x68a   :  { %3089 = vadd.xlane.f32.xlu0 %v3088_v14 }
 0x68e   :  { %3099 = vadd.xlane.f32.xlu0 %v3098_v49 }
 0x70d   :  { %v3087_v59 = vpop.xlane.xlu1 %3086 }
 0x70e   :  { %v3091_v28 = vmul.f32 0.03125, %v3087_v59 }
 0x70f   :  { %v3097_v27 = vpop.xlane.xlu0 %3096 }
 0x710   :  { %v3103_v33 = vmul.f32 %v3091_v28, %v3091_v28  ;;  %v3101_v18 = vmul.f32 0.03125, %v3097_v27  ;;  %v3107_v46 = vsub.f32 %v4595_v24, %v3091_v28 }
 0x712   :  { %v3105_v51 = vsub.f32 %v3101_v18, %v3103_v33 }
 0x713   :  { %v3090_v21 = vpop.xlane.xlu0 %3089 }
 0x714   :  { %v3109_v35 = vadd.f32 1e-05, %v3105_v51  ;;  %v3092_v58 = vmul.f32 0.03125, %v3090_v21 }
 0x716   :  { %3741 = vrsqrt.f32 %v3109_v35  ;;  %v3104_v5 = vmul.f32 %v3092_v58, %v3092_v58  ;;  %v3108_v31 = vsub.f32 %v4604_v3, %v3092_v58 }
 0x717   :  { %v3100_v36 = vpop.xlane.xlu0 %3099 }
 0x718   :  { %v3102_v63 = vmul.f32 0.03125, %v3100_v36 }
 0x71a   :  { %v3106_v11 = vsub.f32 %v3102_v63, %v3104_v5 }
 0x71c   :  { %v3110_v47 = vadd.f32 1e-05, %v3106_v11 }
 0x71e   :  { %3743 = vrsqrt.f32 %v3110_v47 }
 0x723   :  { %v3742_v13 = vpop.eup %3741 }
 0x724   :  { %v3113_v30 = vmul.f32 %v3742_v13, %v3107_v46 }
 0x726   :  { %v3119_v60 = vmul.f32 %v3421_v20, %v3113_v30 }
 0x728   :  { %v3125_v2 = vadd.f32 %v3422_v39, %v3119_v60 }
 0x72b   :  { %v3744_v1 = vpop.eup %3743 }
 0x72c   :  { %v3114_v37 = vmul.f32 %v3744_v1, %v3108_v31 }
 0x72e   :  { %v3120_v61 = vmul.f32 %v3421_v20, %v3114_v37 }
 0x730   :  { %v3126_v55 = vadd.f32 %v3422_v39, %v3120_v61 }
 0x732   :  { %v3127_v38 = vpack.c.bf16 %v3126_v55, %v3125_v2 }
 0x734   :  { %3571 = vmatmul.mubr.msk.bf16.vlgmr.msra.gmra.mxu0 %vm34_vm0, %v3127_v38 }
 0x7f4   :  { %v3185_v7 = vpop.f32.mrf.mxu0 }
 0x7f5   :  { %v3186_v8 = vadd.f32 %v3423_v62, %v3185_v7 }
 0x7f6   :  { %v3572_v25 = vpop.f32.mrf.mxu0 }
 0x7f7   :  { %v3192_v10 = vmul.f32 %v3186_v8, %v3186_v8 }
 0x7f8   :  { %v3188_v23 = vpop.f32.mrf.mxu0 }
 0x7f9   :  { %v3194_v32 = vmul.f32 %v3192_v10, %v3186_v8  ;;  %v3189_v12 = vadd.f32 %v3423_v62, %v3188_v23 }
 0x7fa   :  { %v3573_v29 = vpop.f32.mrf.mxu0 }
 0x7fb   :  { %v3196_v26 = vmul.f32 0.044715, %v3194_v32  ;;  %v3193_v6 = vmul.f32 %v3189_v12, %v3189_v12 }
 0x7fd   :  { %v3198_v57 = vadd.f32 %v3196_v26, %v3186_v8  ;;  %v3195_v19 = vmul.f32 %v3193_v6, %v3189_v12 }
 0x7ff   :  { %v3200_v52 = vmul.f32 0.7978846, %v3198_v57  ;;  %v3197_v48 = vmul.f32 0.044715, %v3195_v19 }
 0x801   :  { %3745 = vtanh.f32 %v3200_v52  ;;  %v3199_v9 = vadd.f32 %v3197_v48, %v3189_v12 }
 0x803   :  { %v3201_v17 = vmul.f32 0.7978846, %v3199_v9 }
 0x805   :  { %3747 = vtanh.f32 %v3201_v17 }
 0x80e   :  { %v3746_v44 = vpop.eup %3745 }
 0x80f   :  { %v3204_v56 = vadd.f32 1.0, %v3746_v44 }
 0x811   :  { %v3206_v42 = vmul.f32 0.5, %v3204_v56 }
 0x812   :  { %v3748_v43 = vpop.eup %3747 }
 0x813   :  { %v3205_v15 = vadd.f32 1.0, %v3748_v43  ;;  %v3208_v34 = vmul.f32 %v3206_v42, %v3186_v8 }
 0x815   :  { %v3207_v14 = vmul.f32 0.5, %v3205_v15 }
 0x817   :  { %v3209_v49 = vmul.f32 %v3207_v14, %v3189_v12 }
 0x819   :  { %v3210_v40 = vpack.c.bf16 %v3209_v49, %v3208_v34 }
 0x81b   :  { %3591 = vmatmul.mubr.bf16.vlgmr.msra.gmra.mxu1 %v3210_v40 }
 0x8db   :  { %v3313_v59 = vpop.f32.mrf.mxu1 }
 0x8dc   :  { %v3314_v28 = vadd.f32 %v3427_v16, %v3313_v59 }
 0x8dd   :  { %v3592_v27 = vpop.f32.mrf.mxu1 }
 0x8de   :  { %v3320_v33 = vadd.f32 %v3314_v28, %v4595_v24 }
 0x8df   :  { %v3316_v18 = vpop.f32.mrf.mxu1 }
 0x8e0   :  { %3322 = vst.msk [vmem:[#allocation2] sm:$0xff] %vm34_vm0, %v3320_v33  ;;  %v3317_v51 = vadd.f32 %v3427_v16, %v3316_v18 }
 0x8e1   :  { %v3593_v21 = vpop.f32.mrf.mxu1 }
 0x8e2   :  { %v3321_v35 = vadd.f32 %v3317_v51, %v4604_v3 }
 0x8e4   :  { %3323 = vst.msk [vmem:[#allocation2 + $0x8] sm:$0xff] %vm34_vm0, %v3321_v35 }
 0x8e5   :  { %3762 = shalt.err (!%p3759_p4)
}
 0x8e6   :  { %s3794_s1 = smov 128  }
 0x8e7   :  { %3335 = dma.vmem_to_hbm [thread:$0]  %s3330_s9, 256, %s4679_s6, [#allocation3], %s3794_s1, %s3794_s1, %s3786_s3  }
 0x8e8   :  { %3771 = dma.done.wait [#allocation3], 256  }
 0x8e9   :  { %3772 = vsyncadd [#allocation3], 4294967040 }
 0x8ea   :  { %3339 = vsyncpa [#allocation3], 1 }

</bundles_post_ra>
